<compile_context>
chip_gen: v7x
topology: tpu7x:2x2x1
jax: 0.10.0
libtpu: 0.0.40
codegen_flags: <defaults>
</compile_context>

<pallas_src>
import math
import functools

import jax
import jax.numpy as jnp
from jax.experimental import pallas as pl
from jax.experimental.pallas import tpu as pltpu


# Row layout of the packed small-parameter slab (L, 8, W).
_ROW_BQKV, _ROW_BO, _ROW_B1, _ROW_B2 = 0, 1, 2, 3
_ROW_LN1G, _ROW_LN1B, _ROW_LN2G, _ROW_LN2B = 4, 5, 6, 7


# ----------------------------------------------------------------------------
# Fused kernel: positional encoding + 2 post-norm transformer encoder layers.
# One grid step = one batch block (whole batch here); everything in VMEM.
# ----------------------------------------------------------------------------
def _fused_middle_kernel(lens_ref, x_ref, pe_ref,
                         wqkv_ref, wo_ref, w1_ref, w2_ref, small_ref,
                         o_ref, *, scale, nhead, nlayers, eps):
    Bb, S, D = x_ref.shape
    Dh = D // nhead
    F = w1_ref.shape[2]
    N = Bb * S
    att_scale = 1.0 / math.sqrt(Dh)
    blk = pl.program_id(0)

    # src = x * sqrt(d_model) + pe[b]  (faithful pe[:B] on batch-first input),
    # flattened to (N, D) rows for all weight matmuls.
    h = (x_ref[...].astype(jnp.float32) * scale
         + pe_ref[...].astype(jnp.float32)).reshape(N, D)

    # Key-padding bias built once from SMEM lengths, pre-broadcast to (Bb,S,S).
    key_idx = jax.lax.broadcasted_iota(jnp.int32, (Bb, S, S), 2)
    batch_idx = jax.lax.broadcasted_iota(jnp.int32, (Bb, S, S), 0)
    lens_full = jnp.zeros((Bb, S, S), jnp.int32)
    for i in range(Bb):                            # static unroll (Bb tiny)
        lens_full = jnp.where(batch_idx == i, lens_ref[blk * Bb + i], lens_full)
    bias = jnp.where(key_idx >= lens_full, jnp.float32(-1e9), jnp.float32(0.0))

    def layernorm(y, g, b):
        mean = jnp.mean(y, axis=-1, keepdims=True)
        var = jnp.mean((y - mean) ** 2, axis=-1, keepdims=True)
        return (y - mean) * jax.lax.rsqrt(var + eps) * g + b

    for l in range(nlayers):                       # static unroll (nlayers = 2)
        sp = small_ref[l]                          # (8, W) f32, one tiny load
        bqkv = sp[_ROW_BQKV:_ROW_BQKV + 1, :3 * D]
        bo = sp[_ROW_BO:_ROW_BO + 1, :D]
        b1 = sp[_ROW_B1:_ROW_B1 + 1, :F]
        b2 = sp[_ROW_B2:_ROW_B2 + 1, :D]
        ln1g = sp[_ROW_LN1G:_ROW_LN1G + 1, :D]
        ln1b = sp[_ROW_LN1B:_ROW_LN1B + 1, :D]
        ln2g = sp[_ROW_LN2G:_ROW_LN2G + 1, :D]
        ln2b = sp[_ROW_LN2B:_ROW_LN2B + 1, :D]

        # ---- fused QKV projection on the flattened batch: (N,D)@(D,3D) ----
        qkv = jnp.dot(h.astype(jnp.bfloat16), wqkv_ref[l],
                      preferred_element_type=jnp.float32) + bqkv

        # ---- multi-head self-attention, batched over Bb, no head concat ---
        attn = None
        for hd in range(nhead):                    # static per-head loop
            q = qkv[:, hd * Dh:(hd + 1) * Dh].reshape(Bb, S, Dh)
            k = qkv[:, D + hd * Dh:D + (hd + 1) * Dh].reshape(Bb, S, Dh)
            v = qkv[:, 2 * D + hd * Dh:2 * D + (hd + 1) * Dh].reshape(Bb, S, Dh)
            # scores[b,i,j] = sum_d q[b,i,d] k[b,j,d]
            s = jax.lax.dot_general(q, k, (((2,), (2,)), ((0,), (0,))),
                                    preferred_element_type=jnp.float32)
            s = s * att_scale + bias
            m = jnp.max(s, axis=-1, keepdims=True)
            p = jnp.exp(s - m)
            denom = jnp.sum(p, axis=-1, keepdims=True)
            p = p * pl.reciprocal(denom, approx=True)
            head = jax.lax.dot_general(p, v, (((2,), (1,)), ((0,), (0,))),
                                       preferred_element_type=jnp.float32)
            head = head.reshape(N, Dh).astype(jnp.bfloat16)
            # project through this head's rows of W_o and accumulate
            contrib = jnp.dot(head, wo_ref[l * nhead + hd],
                              preferred_element_type=jnp.float32)
            attn = contrib if attn is None else attn + contrib
        attn = attn + bo

        # ---- post-norm residual 1 ----
        h = layernorm(attn + h, ln1g, ln1b)

        # ---- feed-forward (relu) ----
        f = jnp.dot(h.astype(jnp.bfloat16), w1_ref[l],
                    preferred_element_type=jnp.float32) + b1
        f = jnp.maximum(f, 0.0)
        f = jnp.dot(f.astype(jnp.bfloat16), w2_ref[l],
                    preferred_element_type=jnp.float32) + b2

        # ---- post-norm residual 2 ----
        h = layernorm(f + h, ln2g, ln2b)

    o_ref[...] = h.reshape(Bb, S, D).astype(o_ref.dtype)


# ----------------------------------------------------------------------------
# Wrapper: one pallas_call for the whole forward.
# ----------------------------------------------------------------------------
def middle_forward(fromencoder, input_masking, params, d_model, nhead):
    """fromencoder: (B, S, D) f32; input_masking: (B, S) bool (True = pad)."""
    B, S, D = fromencoder.shape
    L = params["wqkv"].shape[0]
    F = params["w1"].shape[2]
    Dh = D // nhead
    W = max(3 * D, F, D)

    # key-padding mask (True = pad) -> per-batch valid length (SMEM scalars).
    # TODO(synk): assumes contiguous tail padding (standard key-padding mask);
    # a non-contiguous mask would need the dense-mask path.
    valid_lens = jnp.sum(jnp.logical_not(input_masking), axis=-1).astype(jnp.int32)

    pe_slice = params["pe"][:B]                            # (B, 1, D)

    # bf16 weights for the MXU matmuls; W_o pre-split per head (row slices).
    wqkv = params["wqkv"].astype(jnp.bfloat16)             # (L, D, 3D)
    wo_heads = params["wo"].astype(jnp.bfloat16).reshape(L * nhead, Dh, D)
    w1 = params["w1"].astype(jnp.bfloat16)                 # (L, D, F)
    w2 = params["w2"].astype(jnp.bfloat16)                 # (L, F, D)

    # Pack the eight tiny per-layer tensors into one (L, 8, W) f32 slab.
    def pad_to_w(x):
        return jnp.pad(x, ((0, 0), (0, 0), (0, W - x.shape[-1])))
    small = jnp.concatenate(
        [pad_to_w(params[n]) for n in
         ("bqkv", "bo", "b1", "b2", "ln1_g", "ln1_b", "ln2_g", "ln2_b")],
        axis=1)                                            # (L, 8, W)

    B_blk = B                     # whole (tiny) batch in a single grid step
    assert B % B_blk == 0
    n_blocks = B // B_blk

    kernel = functools.partial(
        _fused_middle_kernel,
        scale=math.sqrt(d_model), nhead=nhead, nlayers=L, eps=1e-5)

    def full(shape):
        return pl.BlockSpec(shape, lambda b, lens: (0,) * len(shape))

    return pl.pallas_call(
        kernel,
        out_shape=jax.ShapeDtypeStruct((B, S, D), fromencoder.dtype),
        grid_spec=pltpu.PrefetchScalarGridSpec(
            num_scalar_prefetch=1,                          # valid_lens -> SMEM
            grid=(n_blocks,),
            in_specs=[
                pl.BlockSpec((B_blk, S, D), lambda b, lens: (b, 0, 0)),  # x
                pl.BlockSpec((B_blk, 1, D), lambda b, lens: (b, 0, 0)),  # pe rows
                full((L, D, 3 * D)),                        # wqkv (bf16)
                full((L * nhead, Dh, D)),                    # wo per head (bf16)
                full((L, D, F)),                             # w1 (bf16)
                full((L, F, D)),                             # w2 (bf16)
                full((L, 8, W)),                             # packed small params
            ],
            out_specs=pl.BlockSpec((B_blk, S, D), lambda b, lens: (b, 0, 0)),
        ),
        # Single step on one core: no "parallel" split over the tiny batch, so
        # the dominant weight DMA is done once, not once per TensorCore.
        compiler_params=pltpu.CompilerParams(
            dimension_semantics=("arbitrary",)),
    )(valid_lens, fromencoder, pe_slice, wqkv, wo_heads, w1, w2, small)


# ----------------------------------------------------------------------------
# Deterministic synthetic parameters (stacked over layers).
# ----------------------------------------------------------------------------
def init_params(key, d_model, dff, nlayers, max_len=64):
    position = jnp.arange(max_len, dtype=jnp.float32)[:, None]
    div_term = jnp.exp(jnp.arange(0, d_model, 2, dtype=jnp.float32)
                       * (-math.log(10000.0) / d_model))
    pe = jnp.zeros((max_len, 1, d_model), jnp.float32)
    pe = pe.at[:, 0, 0::2].set(jnp.sin(position * div_term))
    pe = pe.at[:, 0, 1::2].set(jnp.cos(position * div_term))

    def one_layer(k):
        ks = jax.random.split(k, 6)
        wq = 0.02 * jax.random.normal(ks[0], (d_model, d_model), jnp.float32)
        wk = 0.02 * jax.random.normal(ks[1], (d_model, d_model), jnp.float32)
        wv = 0.02 * jax.random.normal(ks[2], (d_model, d_model), jnp.float32)
        return dict(
            wqkv=jnp.concatenate([wq, wk, wv], axis=1),        # (D, 3D)
            bqkv=jnp.zeros((1, 3 * d_model), jnp.float32),
            wo=0.02 * jax.random.normal(ks[3], (d_model, d_model), jnp.float32),
            bo=jnp.zeros((1, d_model), jnp.float32),
            w1=0.02 * jax.random.normal(ks[4], (d_model, dff), jnp.float32),
            b1=jnp.zeros((1, dff), jnp.float32),
            w2=0.02 * jax.random.normal(ks[5], (dff, d_model), jnp.float32),
            b2=jnp.zeros((1, d_model), jnp.float32),
            ln1_g=jnp.ones((1, d_model), jnp.float32),
            ln1_b=jnp.zeros((1, d_model), jnp.float32),
            ln2_g=jnp.ones((1, d_model), jnp.float32),
            ln2_b=jnp.zeros((1, d_model), jnp.float32),
        )

    layer_keys = jax.random.split(key, nlayers)
    per_layer = [one_layer(k) for k in layer_keys]
    params = {name: jnp.stack([p[name] for p in per_layer], axis=0)
              for name in per_layer[0]}
    params["pe"] = pe
    return params


# ----------------------------------------------------------------------------
# Pure-JAX reference (f32, for a numerical sanity check).
# ----------------------------------------------------------------------------
def _reference_forward(x, mask, params, d_model, nhead, eps=1e-5):
    B, S, D = x.shape
    Dh = D // nhead

    def ln(y, g, b):
        m = jnp.mean(y, axis=-1, keepdims=True)
        v = jnp.mean((y - m) ** 2, axis=-1, keepdims=True)
        return (y - m) / jnp.sqrt(v + eps) * g + b

    h = x * math.sqrt(d_model) + params["pe"][:B]
    bias = jnp.where(mask, -1e9, 0.0)[:, None, None, :]       # (B,1,1,S)
    for l in range(params["wqkv"].shape[0]):
        qkv = h @ params["wqkv"][l] + params["bqkv"][l]
        q, k, v = jnp.split(qkv, 3, axis=-1)
        sh = lambda t: t.reshape(B, S, nhead, Dh).transpose(0, 2, 1, 3)
        q, k, v = sh(q), sh(k), sh(v)
        s = jnp.einsum("bhqd,bhkd->bhqk", q, k) / math.sqrt(Dh) + bias
        p = jax.nn.softmax(s, axis=-1)
        o = jnp.einsum("bhqk,bhkd->bhqd", p, v)
        o = o.transpose(0, 2, 1, 3).reshape(B, S, D)
        attn = o @ params["wo"][l] + params["bo"][l]
        h = ln(attn + h, params["ln1_g"][l], params["ln1_b"][l])
        f = jax.nn.relu(h @ params["w1"][l] + params["b1"][l])
        f = f @ params["w2"][l] + params["b2"][l]
        h = ln(f + h, params["ln2_g"][l], params["ln2_b"][l])
    return h


# ----------------------------------------------------------------------------
if __name__ == "__main__":
    # Small, forward-consistent shapes:
    # ENV_CNN_FILTERS=32, ENV_CNN_KERNELS=4 -> d_model = 128; nhead=2; 2 layers.
    # (dim_feedforward scaled down from 2048 to 256 for the small demo.)
    B, S = 2, 8
    d_model, nhead, dff, nlayers = 128, 2, 256, 2

    key = jax.random.PRNGKey(0)
    k_in, k_par = jax.random.split(key)

    fromencoder = jax.random.normal(k_in, (B, S, d_model), jnp.float32)
    # key padding mask: True = ignore this key position
    valid_lens = jnp.array([S, S - 2])
    input_masking = jnp.arange(S)[None, :] >= valid_lens[:, None]   # (B, S) bool

    params = init_params(k_par, d_model, dff, nlayers)

    out = middle_forward(fromencoder, input_masking, params, d_model, nhead)
    out = jax.block_until_ready(out)
    assert out.shape == (B, S, d_model)
    assert bool(jnp.all(jnp.isfinite(out)))

    ref = _reference_forward(fromencoder, input_masking, params, d_model, nhead)
    max_err = float(jnp.max(jnp.abs(out - ref)))
    assert max_err < 5e-2, f"mismatch vs reference: {max_err}"

    print("KERNEL_OK")
</pallas_src>

<mosaic_0001>
module attributes {stable_mosaic.version = 11 : i64} {
  func.func @_fused_middle_kernel(%arg0: i32, %arg1: memref<2xi32, #tpu.memory_space<smem>>, %arg2: memref<2x8x128xf32, #tpu.memory_space<vmem>>, %arg3: memref<2x1x128xf32, #tpu.memory_space<vmem>>, %arg4: memref<2x128x384xbf16, #tpu.memory_space<vmem>>, %arg5: memref<4x64x128xbf16, #tpu.memory_space<vmem>>, %arg6: memref<2x128x256xbf16, #tpu.memory_space<vmem>>, %arg7: memref<2x256x128xbf16, #tpu.memory_space<vmem>>, %arg8: memref<2x8x384xf32, #tpu.memory_space<vmem>>, %arg9: memref<2x8x128xf32, #tpu.memory_space<vmem>>) attributes {dimension_semantics = [#tpu.dimension_semantics<arbitrary>], iteration_bounds = array<i64: 1>, scalar_prefetch = 1 : i64, scratch_operands = 0 : i64, tpu.core_type = #tpu.core_type<tc>, window_params = [{transform_indices = @transform_0, window_bounds = array<i64: 2, 8, 128>}, {transform_indices = @transform_1, window_bounds = array<i64: 2, 1, 128>}, {pipeline_mode = #tpu.pipeline_mode<synchronous>, transform_indices = @transform_2, window_bounds = array<i64: 2, 128, 384>}, {pipeline_mode = #tpu.pipeline_mode<synchronous>, transform_indices = @transform_3, window_bounds = array<i64: 4, 64, 128>}, {pipeline_mode = #tpu.pipeline_mode<synchronous>, transform_indices = @transform_4, window_bounds = array<i64: 2, 128, 256>}, {pipeline_mode = #tpu.pipeline_mode<synchronous>, transform_indices = @transform_5, window_bounds = array<i64: 2, 256, 128>}, {pipeline_mode = #tpu.pipeline_mode<synchronous>, transform_indices = @transform_6, window_bounds = array<i64: 2, 8, 384>}, {transform_indices = @transform_7, window_bounds = array<i64: 2, 8, 128>}]} {
    %c0 = arith.constant 0 : index
    %c0_0 = arith.constant 0 : index
    %c0_1 = arith.constant 0 : index
    %0 = vector.load %arg2[%c0, %c0_0, %c0_1] : memref<2x8x128xf32, #tpu.memory_space<vmem>>, vector<2x8x128xf32>
    %cst = arith.constant 11.3137083 : f32
    %1 = vector.broadcast %cst : f32 to vector<2x8x128xf32>
    %2 = arith.mulf %0, %1 : vector<2x8x128xf32>
    %c0_2 = arith.constant 0 : index
    %c0_3 = arith.constant 0 : index
    %c0_4 = arith.constant 0 : index
    %3 = vector.load %arg3[%c0_2, %c0_3, %c0_4] : memref<2x1x128xf32, #tpu.memory_space<vmem>>, vector<2x1x128xf32>
    %4 = vector.broadcast %3 : vector<2x1x128xf32> to vector<2x8x128xf32>
    %5 = arith.addf %2, %4 : vector<2x8x128xf32>
    %6 = vector.shape_cast %5 : vector<2x8x128xf32> to vector<16x128xf32>
    %7 = tpu.iota {dimensions = array<i32: 2>} : vector<2x8x8xi32>
    %8 = tpu.iota {dimensions = array<i32: 0>} : vector<2x8x8xi32>
    %c0_i32 = arith.constant 0 : i32
    %9 = vector.broadcast %c0_i32 : i32 to vector<2x8x8xi32>
    %c0_i32_5 = arith.constant 0 : i32
    %10 = vector.broadcast %c0_i32_5 : i32 to vector<2x8x8xi32>
    %11 = arith.cmpi eq, %8, %10 : vector<2x8x8xi32>
    %c2_i32 = arith.constant 2 : i32
    %12 = arith.muli %arg0, %c2_i32 : i32
    %c0_i32_6 = arith.constant 0 : i32
    %13 = arith.addi %12, %c0_i32_6 : i32
    %14 = arith.index_cast %13 : i32 to index
    %15 = memref.load %arg1[%14] : memref<2xi32, #tpu.memory_space<smem>>
    %16 = vector.broadcast %15 : i32 to vector<2x8x8xi32>
    %17 = arith.select %11, %16, %9 : vector<2x8x8xi1>, vector<2x8x8xi32>
    %c1_i32 = arith.constant 1 : i32
    %18 = vector.broadcast %c1_i32 : i32 to vector<2x8x8xi32>
    %19 = arith.cmpi eq, %8, %18 : vector<2x8x8xi32>
    %c2_i32_7 = arith.constant 2 : i32
    %20 = arith.muli %arg0, %c2_i32_7 : i32
    %c1_i32_8 = arith.constant 1 : i32
    %21 = arith.addi %20, %c1_i32_8 : i32
    %22 = arith.index_cast %21 : i32 to index
    %23 = memref.load %arg1[%22] : memref<2xi32, #tpu.memory_space<smem>>
    %24 = vector.broadcast %23 : i32 to vector<2x8x8xi32>
    %25 = arith.select %19, %24, %17 : vector<2x8x8xi1>, vector<2x8x8xi32>
    %26 = arith.cmpi sge, %7, %25 : vector<2x8x8xi32>
    %cst_9 = arith.constant -1.000000e+09 : f32
    %cst_10 = arith.constant 0.000000e+00 : f32
    %27 = vector.broadcast %cst_9 : f32 to vector<2x8x8xf32>
    %28 = vector.broadcast %cst_10 : f32 to vector<2x8x8xf32>
    %29 = arith.select %26, %27, %28 : vector<2x8x8xi1>, vector<2x8x8xf32>
    %c0_11 = arith.constant 0 : index
    %c0_12 = arith.constant 0 : index
    %c0_13 = arith.constant 0 : index
    %30 = vector.load %arg8[%c0_11, %c0_12, %c0_13] : memref<2x8x384xf32, #tpu.memory_space<vmem>>, vector<1x8x384xf32>
    %31 = vector.shape_cast %30 : vector<1x8x384xf32> to vector<8x384xf32>
    %32 = vector.extract_strided_slice %31 {offsets = [0, 0], sizes = [1, 384], strides = [1, 1]} : vector<8x384xf32> to vector<1x384xf32>
    %33 = vector.extract_strided_slice %31 {offsets = [1, 0], sizes = [1, 128], strides = [1, 1]} : vector<8x384xf32> to vector<1x128xf32>
    %34 = vector.extract_strided_slice %31 {offsets = [2, 0], sizes = [1, 256], strides = [1, 1]} : vector<8x384xf32> to vector<1x256xf32>
    %35 = vector.extract_strided_slice %31 {offsets = [3, 0], sizes = [1, 128], strides = [1, 1]} : vector<8x384xf32> to vector<1x128xf32>
    %36 = vector.extract_strided_slice %31 {offsets = [4, 0], sizes = [1, 128], strides = [1, 1]} : vector<8x384xf32> to vector<1x128xf32>
    %37 = vector.extract_strided_slice %31 {offsets = [5, 0], sizes = [1, 128], strides = [1, 1]} : vector<8x384xf32> to vector<1x128xf32>
    %38 = vector.extract_strided_slice %31 {offsets = [6, 0], sizes = [1, 128], strides = [1, 1]} : vector<8x384xf32> to vector<1x128xf32>
    %39 = vector.extract_strided_slice %31 {offsets = [7, 0], sizes = [1, 128], strides = [1, 1]} : vector<8x384xf32> to vector<1x128xf32>
    %40 = arith.truncf %6 : vector<16x128xf32> to vector<16x128xbf16>
    %c0_14 = arith.constant 0 : index
    %c0_15 = arith.constant 0 : index
    %c0_16 = arith.constant 0 : index
    %41 = vector.load %arg4[%c0_14, %c0_15, %c0_16] : memref<2x128x384xbf16, #tpu.memory_space<vmem>>, vector<1x128x384xbf16>
    %42 = vector.shape_cast %41 : vector<1x128x384xbf16> to vector<128x384xbf16>
    %cst_17 = arith.constant dense<0.000000e+00> : vector<16x384xf32>
    %43 = tpu.matmul %40, %42, %cst_17 {dimension_numbers = #tpu.dot_dimension_numbers<[1], [0], [0], [1], [0, 0, 1, 1], [], []>} : vector<16x128xbf16>, vector<128x384xbf16>, vector<16x384xf32> -> vector<16x384xf32>
    %44 = vector.broadcast %32 : vector<1x384xf32> to vector<16x384xf32>
    %45 = arith.addf %43, %44 : vector<16x384xf32>
    %46 = vector.extract_strided_slice %45 {offsets = [0, 0], sizes = [16, 64], strides = [1, 1]} : vector<16x384xf32> to vector<16x64xf32>
    %47 = vector.shape_cast %46 : vector<16x64xf32> to vector<2x8x64xf32>
    %48 = vector.extract_strided_slice %45 {offsets = [0, 128], sizes = [16, 64], strides = [1, 1]} : vector<16x384xf32> to vector<16x64xf32>
    %49 = vector.shape_cast %48 : vector<16x64xf32> to vector<2x8x64xf32>
    %50 = vector.extract_strided_slice %45 {offsets = [0, 256], sizes = [16, 64], strides = [1, 1]} : vector<16x384xf32> to vector<16x64xf32>
    %51 = vector.shape_cast %50 : vector<16x64xf32> to vector<2x8x64xf32>
    %cst_18 = arith.constant dense<0.000000e+00> : vector<2x8x8xf32>
    %52 = tpu.matmul %47, %49, %cst_18 {dimension_numbers = #tpu.dot_dimension_numbers<[2], [2], [1], [1], [0, 0, 0, 1, 1, 1], [0], [0]>} : vector<2x8x64xf32>, vector<2x8x64xf32>, vector<2x8x8xf32> -> vector<2x8x8xf32>
    %cst_19 = arith.constant 1.250000e-01 : f32
    %53 = vector.broadcast %cst_19 : f32 to vector<2x8x8xf32>
    %54 = arith.mulf %52, %53 : vector<2x8x8xf32>
    %55 = arith.addf %54, %29 : vector<2x8x8xf32>
    %cst_20 = arith.constant dense<0xFF800000> : vector<2x8xf32>
    %56 = vector.multi_reduction <maximumf>, %55, %cst_20 [2] : vector<2x8x8xf32> to vector<2x8xf32>
    %57 = vector.shape_cast %56 : vector<2x8xf32> to vector<2x8x1xf32>
    %58 = vector.broadcast %57 : vector<2x8x1xf32> to vector<2x8x8xf32>
    %59 = arith.subf %55, %58 : vector<2x8x8xf32>
    %60 = math.exp %59 : vector<2x8x8xf32>
    %cst_21 = arith.constant dense<0.000000e+00> : vector<2x8xf32>
    %61 = vector.multi_reduction <add>, %60, %cst_21 [2] : vector<2x8x8xf32> to vector<2x8xf32>
    %62 = vector.shape_cast %61 : vector<2x8xf32> to vector<2x8x1xf32>
    %63 = tpu.reciprocal %62 {approx = true} : vector<2x8x1xf32> -> vector<2x8x1xf32>
    %64 = vector.broadcast %63 : vector<2x8x1xf32> to vector<2x8x8xf32>
    %65 = arith.mulf %60, %64 : vector<2x8x8xf32>
    %cst_22 = arith.constant dense<0.000000e+00> : vector<2x8x64xf32>
    %66 = tpu.matmul %65, %51, %cst_22 {dimension_numbers = #tpu.dot_dimension_numbers<[2], [1], [1], [2], [0, 0, 0, 1, 1, 2], [0], [0]>} : vector<2x8x8xf32>, vector<2x8x64xf32>, vector<2x8x64xf32> -> vector<2x8x64xf32>
    %67 = vector.shape_cast %66 : vector<2x8x64xf32> to vector<16x64xf32>
    %68 = arith.truncf %67 : vector<16x64xf32> to vector<16x64xbf16>
    %c0_23 = arith.constant 0 : index
    %c0_24 = arith.constant 0 : index
    %c0_25 = arith.constant 0 : index
    %69 = vector.load %arg5[%c0_23, %c0_24, %c0_25] : memref<4x64x128xbf16, #tpu.memory_space<vmem>>, vector<1x64x128xbf16>
    %70 = vector.shape_cast %69 : vector<1x64x128xbf16> to vector<64x128xbf16>
    %cst_26 = arith.constant dense<0.000000e+00> : vector<16x128xf32>
    %71 = tpu.matmul %68, %70, %cst_26 {dimension_numbers = #tpu.dot_dimension_numbers<[1], [0], [0], [1], [0, 0, 1, 1], [], []>} : vector<16x64xbf16>, vector<64x128xbf16>, vector<16x128xf32> -> vector<16x128xf32>
    %72 = vector.extract_strided_slice %45 {offsets = [0, 64], sizes = [16, 64], strides = [1, 1]} : vector<16x384xf32> to vector<16x64xf32>
    %73 = vector.shape_cast %72 : vector<16x64xf32> to vector<2x8x64xf32>
    %74 = vector.extract_strided_slice %45 {offsets = [0, 192], sizes = [16, 64], strides = [1, 1]} : vector<16x384xf32> to vector<16x64xf32>
    %75 = vector.shape_cast %74 : vector<16x64xf32> to vector<2x8x64xf32>
    %76 = vector.extract_strided_slice %45 {offsets = [0, 320], sizes = [16, 64], strides = [1, 1]} : vector<16x384xf32> to vector<16x64xf32>
    %77 = vector.shape_cast %76 : vector<16x64xf32> to vector<2x8x64xf32>
    %cst_27 = arith.constant dense<0.000000e+00> : vector<2x8x8xf32>
    %78 = tpu.matmul %73, %75, %cst_27 {dimension_numbers = #tpu.dot_dimension_numbers<[2], [2], [1], [1], [0, 0, 0, 1, 1, 1], [0], [0]>} : vector<2x8x64xf32>, vector<2x8x64xf32>, vector<2x8x8xf32> -> vector<2x8x8xf32>
    %cst_28 = arith.constant 1.250000e-01 : f32
    %79 = vector.broadcast %cst_28 : f32 to vector<2x8x8xf32>
    %80 = arith.mulf %78, %79 : vector<2x8x8xf32>
    %81 = arith.addf %80, %29 : vector<2x8x8xf32>
    %cst_29 = arith.constant dense<0xFF800000> : vector<2x8xf32>
    %82 = vector.multi_reduction <maximumf>, %81, %cst_29 [2] : vector<2x8x8xf32> to vector<2x8xf32>
    %83 = vector.shape_cast %82 : vector<2x8xf32> to vector<2x8x1xf32>
    %84 = vector.broadcast %83 : vector<2x8x1xf32> to vector<2x8x8xf32>
    %85 = arith.subf %81, %84 : vector<2x8x8xf32>
    %86 = math.exp %85 : vector<2x8x8xf32>
    %cst_30 = arith.constant dense<0.000000e+00> : vector<2x8xf32>
    %87 = vector.multi_reduction <add>, %86, %cst_30 [2] : vector<2x8x8xf32> to vector<2x8xf32>
    %88 = vector.shape_cast %87 : vector<2x8xf32> to vector<2x8x1xf32>
    %89 = tpu.reciprocal %88 {approx = true} : vector<2x8x1xf32> -> vector<2x8x1xf32>
    %90 = vector.broadcast %89 : vector<2x8x1xf32> to vector<2x8x8xf32>
    %91 = arith.mulf %86, %90 : vector<2x8x8xf32>
    %cst_31 = arith.constant dense<0.000000e+00> : vector<2x8x64xf32>
    %92 = tpu.matmul %91, %77, %cst_31 {dimension_numbers = #tpu.dot_dimension_numbers<[2], [1], [1], [2], [0, 0, 0, 1, 1, 2], [0], [0]>} : vector<2x8x8xf32>, vector<2x8x64xf32>, vector<2x8x64xf32> -> vector<2x8x64xf32>
    %93 = vector.shape_cast %92 : vector<2x8x64xf32> to vector<16x64xf32>
    %94 = arith.truncf %93 : vector<16x64xf32> to vector<16x64xbf16>
    %c1 = arith.constant 1 : index
    %c0_32 = arith.constant 0 : index
    %c0_33 = arith.constant 0 : index
    %95 = vector.load %arg5[%c1, %c0_32, %c0_33] : memref<4x64x128xbf16, #tpu.memory_space<vmem>>, vector<1x64x128xbf16>
    %96 = vector.shape_cast %95 : vector<1x64x128xbf16> to vector<64x128xbf16>
    %cst_34 = arith.constant dense<0.000000e+00> : vector<16x128xf32>
    %97 = tpu.matmul %94, %96, %cst_34 {dimension_numbers = #tpu.dot_dimension_numbers<[1], [0], [0], [1], [0, 0, 1, 1], [], []>} : vector<16x64xbf16>, vector<64x128xbf16>, vector<16x128xf32> -> vector<16x128xf32>
    %98 = arith.addf %71, %97 : vector<16x128xf32>
    %99 = vector.broadcast %33 : vector<1x128xf32> to vector<16x128xf32>
    %100 = arith.addf %98, %99 : vector<16x128xf32>
    %101 = arith.addf %100, %6 : vector<16x128xf32>
    %cst_35 = arith.constant dense<0.000000e+00> : vector<16xf32>
    %102 = vector.multi_reduction <add>, %101, %cst_35 [1] : vector<16x128xf32> to vector<16xf32>
    %103 = vector.shape_cast %102 : vector<16xf32> to vector<16x1xf32>
    %cst_36 = arith.constant 1.280000e+02 : f32
    %104 = vector.broadcast %cst_36 : f32 to vector<16x1xf32>
    %105 = arith.divf %103, %104 : vector<16x1xf32>
    %106 = vector.broadcast %105 : vector<16x1xf32> to vector<16x128xf32>
    %107 = arith.subf %101, %106 : vector<16x128xf32>
    %108 = arith.mulf %107, %107 : vector<16x128xf32>
    %cst_37 = arith.constant dense<0.000000e+00> : vector<16xf32>
    %109 = vector.multi_reduction <add>, %108, %cst_37 [1] : vector<16x128xf32> to vector<16xf32>
    %110 = vector.shape_cast %109 : vector<16xf32> to vector<16x1xf32>
    %cst_38 = arith.constant 1.280000e+02 : f32
    %111 = vector.broadcast %cst_38 : f32 to vector<16x1xf32>
    %112 = arith.divf %110, %111 : vector<16x1xf32>
    %113 = vector.broadcast %105 : vector<16x1xf32> to vector<16x128xf32>
    %114 = arith.subf %101, %113 : vector<16x128xf32>
    %cst_39 = arith.constant 9.99999974E-6 : f32
    %115 = vector.broadcast %cst_39 : f32 to vector<16x1xf32>
    %116 = arith.addf %112, %115 : vector<16x1xf32>
    %117 = math.rsqrt %116 : vector<16x1xf32>
    %118 = vector.broadcast %117 : vector<16x1xf32> to vector<16x128xf32>
    %119 = arith.mulf %114, %118 : vector<16x128xf32>
    %120 = vector.broadcast %36 : vector<1x128xf32> to vector<16x128xf32>
    %121 = arith.mulf %119, %120 : vector<16x128xf32>
    %122 = vector.broadcast %37 : vector<1x128xf32> to vector<16x128xf32>
    %123 = arith.addf %121, %122 : vector<16x128xf32>
    %124 = arith.truncf %123 : vector<16x128xf32> to vector<16x128xbf16>
    %c0_40 = arith.constant 0 : index
    %c0_41 = arith.constant 0 : index
    %c0_42 = arith.constant 0 : index
    %125 = vector.load %arg6[%c0_40, %c0_41, %c0_42] : memref<2x128x256xbf16, #tpu.memory_space<vmem>>, vector<1x128x256xbf16>
    %126 = vector.shape_cast %125 : vector<1x128x256xbf16> to vector<128x256xbf16>
    %cst_43 = arith.constant dense<0.000000e+00> : vector<16x256xf32>
    %127 = tpu.matmul %124, %126, %cst_43 {dimension_numbers = #tpu.dot_dimension_numbers<[1], [0], [0], [1], [0, 0, 1, 1], [], []>} : vector<16x128xbf16>, vector<128x256xbf16>, vector<16x256xf32> -> vector<16x256xf32>
    %128 = vector.broadcast %34 : vector<1x256xf32> to vector<16x256xf32>
    %129 = arith.addf %127, %128 : vector<16x256xf32>
    %cst_44 = arith.constant 0.000000e+00 : f32
    %130 = vector.broadcast %cst_44 : f32 to vector<16x256xf32>
    %131 = arith.maximumf %129, %130 : vector<16x256xf32>
    %132 = arith.truncf %131 : vector<16x256xf32> to vector<16x256xbf16>
    %c0_45 = arith.constant 0 : index
    %c0_46 = arith.constant 0 : index
    %c0_47 = arith.constant 0 : index
    %133 = vector.load %arg7[%c0_45, %c0_46, %c0_47] : memref<2x256x128xbf16, #tpu.memory_space<vmem>>, vector<1x256x128xbf16>
    %134 = vector.shape_cast %133 : vector<1x256x128xbf16> to vector<256x128xbf16>
    %cst_48 = arith.constant dense<0.000000e+00> : vector<16x128xf32>
    %135 = tpu.matmul %132, %134, %cst_48 {dimension_numbers = #tpu.dot_dimension_numbers<[1], [0], [0], [1], [0, 0, 1, 1], [], []>} : vector<16x256xbf16>, vector<256x128xbf16>, vector<16x128xf32> -> vector<16x128xf32>
    %136 = vector.broadcast %35 : vector<1x128xf32> to vector<16x128xf32>
    %137 = arith.addf %135, %136 : vector<16x128xf32>
    %138 = arith.addf %137, %123 : vector<16x128xf32>
    %cst_49 = arith.constant dense<0.000000e+00> : vector<16xf32>
    %139 = vector.multi_reduction <add>, %138, %cst_49 [1] : vector<16x128xf32> to vector<16xf32>
    %140 = vector.shape_cast %139 : vector<16xf32> to vector<16x1xf32>
    %cst_50 = arith.constant 1.280000e+02 : f32
    %141 = vector.broadcast %cst_50 : f32 to vector<16x1xf32>
    %142 = arith.divf %140, %141 : vector<16x1xf32>
    %143 = vector.broadcast %142 : vector<16x1xf32> to vector<16x128xf32>
    %144 = arith.subf %138, %143 : vector<16x128xf32>
    %145 = arith.mulf %144, %144 : vector<16x128xf32>
    %cst_51 = arith.constant dense<0.000000e+00> : vector<16xf32>
    %146 = vector.multi_reduction <add>, %145, %cst_51 [1] : vector<16x128xf32> to vector<16xf32>
    %147 = vector.shape_cast %146 : vector<16xf32> to vector<16x1xf32>
    %cst_52 = arith.constant 1.280000e+02 : f32
    %148 = vector.broadcast %cst_52 : f32 to vector<16x1xf32>
    %149 = arith.divf %147, %148 : vector<16x1xf32>
    %150 = vector.broadcast %142 : vector<16x1xf32> to vector<16x128xf32>
    %151 = arith.subf %138, %150 : vector<16x128xf32>
    %cst_53 = arith.constant 9.99999974E-6 : f32
    %152 = vector.broadcast %cst_53 : f32 to vector<16x1xf32>
    %153 = arith.addf %149, %152 : vector<16x1xf32>
    %154 = math.rsqrt %153 : vector<16x1xf32>
    %155 = vector.broadcast %154 : vector<16x1xf32> to vector<16x128xf32>
    %156 = arith.mulf %151, %155 : vector<16x128xf32>
    %157 = vector.broadcast %38 : vector<1x128xf32> to vector<16x128xf32>
    %158 = arith.mulf %156, %157 : vector<16x128xf32>
    %159 = vector.broadcast %39 : vector<1x128xf32> to vector<16x128xf32>
    %160 = arith.addf %158, %159 : vector<16x128xf32>
    %c1_54 = arith.constant 1 : index
    %c0_55 = arith.constant 0 : index
    %c0_56 = arith.constant 0 : index
    %161 = vector.load %arg8[%c1_54, %c0_55, %c0_56] : memref<2x8x384xf32, #tpu.memory_space<vmem>>, vector<1x8x384xf32>
    %162 = vector.shape_cast %161 : vector<1x8x384xf32> to vector<8x384xf32>
    %163 = vector.extract_strided_slice %162 {offsets = [0, 0], sizes = [1, 384], strides = [1, 1]} : vector<8x384xf32> to vector<1x384xf32>
    %164 = vector.extract_strided_slice %162 {offsets = [1, 0], sizes = [1, 128], strides = [1, 1]} : vector<8x384xf32> to vector<1x128xf32>
    %165 = vector.extract_strided_slice %162 {offsets = [2, 0], sizes = [1, 256], strides = [1, 1]} : vector<8x384xf32> to vector<1x256xf32>
    %166 = vector.extract_strided_slice %162 {offsets = [3, 0], sizes = [1, 128], strides = [1, 1]} : vector<8x384xf32> to vector<1x128xf32>
    %167 = vector.extract_strided_slice %162 {offsets = [4, 0], sizes = [1, 128], strides = [1, 1]} : vector<8x384xf32> to vector<1x128xf32>
    %168 = vector.extract_strided_slice %162 {offsets = [5, 0], sizes = [1, 128], strides = [1, 1]} : vector<8x384xf32> to vector<1x128xf32>
    %169 = vector.extract_strided_slice %162 {offsets = [6, 0], sizes = [1, 128], strides = [1, 1]} : vector<8x384xf32> to vector<1x128xf32>
    %170 = vector.extract_strided_slice %162 {offsets = [7, 0], sizes = [1, 128], strides = [1, 1]} : vector<8x384xf32> to vector<1x128xf32>
    %171 = arith.truncf %160 : vector<16x128xf32> to vector<16x128xbf16>
    %c1_57 = arith.constant 1 : index
    %c0_58 = arith.constant 0 : index
    %c0_59 = arith.constant 0 : index
    %172 = vector.load %arg4[%c1_57, %c0_58, %c0_59] : memref<2x128x384xbf16, #tpu.memory_space<vmem>>, vector<1x128x384xbf16>
    %173 = vector.shape_cast %172 : vector<1x128x384xbf16> to vector<128x384xbf16>
    %cst_60 = arith.constant dense<0.000000e+00> : vector<16x384xf32>
    %174 = tpu.matmul %171, %173, %cst_60 {dimension_numbers = #tpu.dot_dimension_numbers<[1], [0], [0], [1], [0, 0, 1, 1], [], []>} : vector<16x128xbf16>, vector<128x384xbf16>, vector<16x384xf32> -> vector<16x384xf32>
    %175 = vector.broadcast %163 : vector<1x384xf32> to vector<16x384xf32>
    %176 = arith.addf %174, %175 : vector<16x384xf32>
    %177 = vector.extract_strided_slice %176 {offsets = [0, 0], sizes = [16, 64], strides = [1, 1]} : vector<16x384xf32> to vector<16x64xf32>
    %178 = vector.shape_cast %177 : vector<16x64xf32> to vector<2x8x64xf32>
    %179 = vector.extract_strided_slice %176 {offsets = [0, 128], sizes = [16, 64], strides = [1, 1]} : vector<16x384xf32> to vector<16x64xf32>
    %180 = vector.shape_cast %179 : vector<16x64xf32> to vector<2x8x64xf32>
    %181 = vector.extract_strided_slice %176 {offsets = [0, 256], sizes = [16, 64], strides = [1, 1]} : vector<16x384xf32> to vector<16x64xf32>
    %182 = vector.shape_cast %181 : vector<16x64xf32> to vector<2x8x64xf32>
    %cst_61 = arith.constant dense<0.000000e+00> : vector<2x8x8xf32>
    %183 = tpu.matmul %178, %180, %cst_61 {dimension_numbers = #tpu.dot_dimension_numbers<[2], [2], [1], [1], [0, 0, 0, 1, 1, 1], [0], [0]>} : vector<2x8x64xf32>, vector<2x8x64xf32>, vector<2x8x8xf32> -> vector<2x8x8xf32>
    %cst_62 = arith.constant 1.250000e-01 : f32
    %184 = vector.broadcast %cst_62 : f32 to vector<2x8x8xf32>
    %185 = arith.mulf %183, %184 : vector<2x8x8xf32>
    %186 = arith.addf %185, %29 : vector<2x8x8xf32>
    %cst_63 = arith.constant dense<0xFF800000> : vector<2x8xf32>
    %187 = vector.multi_reduction <maximumf>, %186, %cst_63 [2] : vector<2x8x8xf32> to vector<2x8xf32>
    %188 = vector.shape_cast %187 : vector<2x8xf32> to vector<2x8x1xf32>
    %189 = vector.broadcast %188 : vector<2x8x1xf32> to vector<2x8x8xf32>
    %190 = arith.subf %186, %189 : vector<2x8x8xf32>
    %191 = math.exp %190 : vector<2x8x8xf32>
    %cst_64 = arith.constant dense<0.000000e+00> : vector<2x8xf32>
    %192 = vector.multi_reduction <add>, %191, %cst_64 [2] : vector<2x8x8xf32> to vector<2x8xf32>
    %193 = vector.shape_cast %192 : vector<2x8xf32> to vector<2x8x1xf32>
    %194 = tpu.reciprocal %193 {approx = true} : vector<2x8x1xf32> -> vector<2x8x1xf32>
    %195 = vector.broadcast %194 : vector<2x8x1xf32> to vector<2x8x8xf32>
    %196 = arith.mulf %191, %195 : vector<2x8x8xf32>
    %cst_65 = arith.constant dense<0.000000e+00> : vector<2x8x64xf32>
    %197 = tpu.matmul %196, %182, %cst_65 {dimension_numbers = #tpu.dot_dimension_numbers<[2], [1], [1], [2], [0, 0, 0, 1, 1, 2], [0], [0]>} : vector<2x8x8xf32>, vector<2x8x64xf32>, vector<2x8x64xf32> -> vector<2x8x64xf32>
    %198 = vector.shape_cast %197 : vector<2x8x64xf32> to vector<16x64xf32>
    %199 = arith.truncf %198 : vector<16x64xf32> to vector<16x64xbf16>
    %c2 = arith.constant 2 : index
    %c0_66 = arith.constant 0 : index
    %c0_67 = arith.constant 0 : index
    %200 = vector.load %arg5[%c2, %c0_66, %c0_67] : memref<4x64x128xbf16, #tpu.memory_space<vmem>>, vector<1x64x128xbf16>
    %201 = vector.shape_cast %200 : vector<1x64x128xbf16> to vector<64x128xbf16>
    %cst_68 = arith.constant dense<0.000000e+00> : vector<16x128xf32>
    %202 = tpu.matmul %199, %201, %cst_68 {dimension_numbers = #tpu.dot_dimension_numbers<[1], [0], [0], [1], [0, 0, 1, 1], [], []>} : vector<16x64xbf16>, vector<64x128xbf16>, vector<16x128xf32> -> vector<16x128xf32>
    %203 = vector.extract_strided_slice %176 {offsets = [0, 64], sizes = [16, 64], strides = [1, 1]} : vector<16x384xf32> to vector<16x64xf32>
    %204 = vector.shape_cast %203 : vector<16x64xf32> to vector<2x8x64xf32>
    %205 = vector.extract_strided_slice %176 {offsets = [0, 192], sizes = [16, 64], strides = [1, 1]} : vector<16x384xf32> to vector<16x64xf32>
    %206 = vector.shape_cast %205 : vector<16x64xf32> to vector<2x8x64xf32>
    %207 = vector.extract_strided_slice %176 {offsets = [0, 320], sizes = [16, 64], strides = [1, 1]} : vector<16x384xf32> to vector<16x64xf32>
    %208 = vector.shape_cast %207 : vector<16x64xf32> to vector<2x8x64xf32>
    %cst_69 = arith.constant dense<0.000000e+00> : vector<2x8x8xf32>
    %209 = tpu.matmul %204, %206, %cst_69 {dimension_numbers = #tpu.dot_dimension_numbers<[2], [2], [1], [1], [0, 0, 0, 1, 1, 1], [0], [0]>} : vector<2x8x64xf32>, vector<2x8x64xf32>, vector<2x8x8xf32> -> vector<2x8x8xf32>
    %cst_70 = arith.constant 1.250000e-01 : f32
    %210 = vector.broadcast %cst_70 : f32 to vector<2x8x8xf32>
    %211 = arith.mulf %209, %210 : vector<2x8x8xf32>
    %212 = arith.addf %211, %29 : vector<2x8x8xf32>
    %cst_71 = arith.constant dense<0xFF800000> : vector<2x8xf32>
    %213 = vector.multi_reduction <maximumf>, %212, %cst_71 [2] : vector<2x8x8xf32> to vector<2x8xf32>
    %214 = vector.shape_cast %213 : vector<2x8xf32> to vector<2x8x1xf32>
    %215 = vector.broadcast %214 : vector<2x8x1xf32> to vector<2x8x8xf32>
    %216 = arith.subf %212, %215 : vector<2x8x8xf32>
    %217 = math.exp %216 : vector<2x8x8xf32>
    %cst_72 = arith.constant dense<0.000000e+00> : vector<2x8xf32>
    %218 = vector.multi_reduction <add>, %217, %cst_72 [2] : vector<2x8x8xf32> to vector<2x8xf32>
    %219 = vector.shape_cast %218 : vector<2x8xf32> to vector<2x8x1xf32>
    %220 = tpu.reciprocal %219 {approx = true} : vector<2x8x1xf32> -> vector<2x8x1xf32>
    %221 = vector.broadcast %220 : vector<2x8x1xf32> to vector<2x8x8xf32>
    %222 = arith.mulf %217, %221 : vector<2x8x8xf32>
    %cst_73 = arith.constant dense<0.000000e+00> : vector<2x8x64xf32>
    %223 = tpu.matmul %222, %208, %cst_73 {dimension_numbers = #tpu.dot_dimension_numbers<[2], [1], [1], [2], [0, 0, 0, 1, 1, 2], [0], [0]>} : vector<2x8x8xf32>, vector<2x8x64xf32>, vector<2x8x64xf32> -> vector<2x8x64xf32>
    %224 = vector.shape_cast %223 : vector<2x8x64xf32> to vector<16x64xf32>
    %225 = arith.truncf %224 : vector<16x64xf32> to vector<16x64xbf16>
    %c3 = arith.constant 3 : index
    %c0_74 = arith.constant 0 : index
    %c0_75 = arith.constant 0 : index
    %226 = vector.load %arg5[%c3, %c0_74, %c0_75] : memref<4x64x128xbf16, #tpu.memory_space<vmem>>, vector<1x64x128xbf16>
    %227 = vector.shape_cast %226 : vector<1x64x128xbf16> to vector<64x128xbf16>
    %cst_76 = arith.constant dense<0.000000e+00> : vector<16x128xf32>
    %228 = tpu.matmul %225, %227, %cst_76 {dimension_numbers = #tpu.dot_dimension_numbers<[1], [0], [0], [1], [0, 0, 1, 1], [], []>} : vector<16x64xbf16>, vector<64x128xbf16>, vector<16x128xf32> -> vector<16x128xf32>
    %229 = arith.addf %202, %228 : vector<16x128xf32>
    %230 = vector.broadcast %164 : vector<1x128xf32> to vector<16x128xf32>
    %231 = arith.addf %229, %230 : vector<16x128xf32>
    %232 = arith.addf %231, %160 : vector<16x128xf32>
    %cst_77 = arith.constant dense<0.000000e+00> : vector<16xf32>
    %233 = vector.multi_reduction <add>, %232, %cst_77 [1] : vector<16x128xf32> to vector<16xf32>
    %234 = vector.shape_cast %233 : vector<16xf32> to vector<16x1xf32>
    %cst_78 = arith.constant 1.280000e+02 : f32
    %235 = vector.broadcast %cst_78 : f32 to vector<16x1xf32>
    %236 = arith.divf %234, %235 : vector<16x1xf32>
    %237 = vector.broadcast %236 : vector<16x1xf32> to vector<16x128xf32>
    %238 = arith.subf %232, %237 : vector<16x128xf32>
    %239 = arith.mulf %238, %238 : vector<16x128xf32>
    %cst_79 = arith.constant dense<0.000000e+00> : vector<16xf32>
    %240 = vector.multi_reduction <add>, %239, %cst_79 [1] : vector<16x128xf32> to vector<16xf32>
    %241 = vector.shape_cast %240 : vector<16xf32> to vector<16x1xf32>
    %cst_80 = arith.constant 1.280000e+02 : f32
    %242 = vector.broadcast %cst_80 : f32 to vector<16x1xf32>
    %243 = arith.divf %241, %242 : vector<16x1xf32>
    %244 = vector.broadcast %236 : vector<16x1xf32> to vector<16x128xf32>
    %245 = arith.subf %232, %244 : vector<16x128xf32>
    %cst_81 = arith.constant 9.99999974E-6 : f32
    %246 = vector.broadcast %cst_81 : f32 to vector<16x1xf32>
    %247 = arith.addf %243, %246 : vector<16x1xf32>
    %248 = math.rsqrt %247 : vector<16x1xf32>
    %249 = vector.broadcast %248 : vector<16x1xf32> to vector<16x128xf32>
    %250 = arith.mulf %245, %249 : vector<16x128xf32>
    %251 = vector.broadcast %167 : vector<1x128xf32> to vector<16x128xf32>
    %252 = arith.mulf %250, %251 : vector<16x128xf32>
    %253 = vector.broadcast %168 : vector<1x128xf32> to vector<16x128xf32>
    %254 = arith.addf %252, %253 : vector<16x128xf32>
    %255 = arith.truncf %254 : vector<16x128xf32> to vector<16x128xbf16>
    %c1_82 = arith.constant 1 : index
    %c0_83 = arith.constant 0 : index
    %c0_84 = arith.constant 0 : index
    %256 = vector.load %arg6[%c1_82, %c0_83, %c0_84] : memref<2x128x256xbf16, #tpu.memory_space<vmem>>, vector<1x128x256xbf16>
    %257 = vector.shape_cast %256 : vector<1x128x256xbf16> to vector<128x256xbf16>
    %cst_85 = arith.constant dense<0.000000e+00> : vector<16x256xf32>
    %258 = tpu.matmul %255, %257, %cst_85 {dimension_numbers = #tpu.dot_dimension_numbers<[1], [0], [0], [1], [0, 0, 1, 1], [], []>} : vector<16x128xbf16>, vector<128x256xbf16>, vector<16x256xf32> -> vector<16x256xf32>
    %259 = vector.broadcast %165 : vector<1x256xf32> to vector<16x256xf32>
    %260 = arith.addf %258, %259 : vector<16x256xf32>
    %cst_86 = arith.constant 0.000000e+00 : f32
    %261 = vector.broadcast %cst_86 : f32 to vector<16x256xf32>
    %262 = arith.maximumf %260, %261 : vector<16x256xf32>
    %263 = arith.truncf %262 : vector<16x256xf32> to vector<16x256xbf16>
    %c1_87 = arith.constant 1 : index
    %c0_88 = arith.constant 0 : index
    %c0_89 = arith.constant 0 : index
    %264 = vector.load %arg7[%c1_87, %c0_88, %c0_89] : memref<2x256x128xbf16, #tpu.memory_space<vmem>>, vector<1x256x128xbf16>
    %265 = vector.shape_cast %264 : vector<1x256x128xbf16> to vector<256x128xbf16>
    %cst_90 = arith.constant dense<0.000000e+00> : vector<16x128xf32>
    %266 = tpu.matmul %263, %265, %cst_90 {dimension_numbers = #tpu.dot_dimension_numbers<[1], [0], [0], [1], [0, 0, 1, 1], [], []>} : vector<16x256xbf16>, vector<256x128xbf16>, vector<16x128xf32> -> vector<16x128xf32>
    %267 = vector.broadcast %166 : vector<1x128xf32> to vector<16x128xf32>
    %268 = arith.addf %266, %267 : vector<16x128xf32>
    %269 = arith.addf %268, %254 : vector<16x128xf32>
    %cst_91 = arith.constant dense<0.000000e+00> : vector<16xf32>
    %270 = vector.multi_reduction <add>, %269, %cst_91 [1] : vector<16x128xf32> to vector<16xf32>
    %271 = vector.shape_cast %270 : vector<16xf32> to vector<16x1xf32>
    %cst_92 = arith.constant 1.280000e+02 : f32
    %272 = vector.broadcast %cst_92 : f32 to vector<16x1xf32>
    %273 = arith.divf %271, %272 : vector<16x1xf32>
    %274 = vector.broadcast %273 : vector<16x1xf32> to vector<16x128xf32>
    %275 = arith.subf %269, %274 : vector<16x128xf32>
    %276 = arith.mulf %275, %275 : vector<16x128xf32>
    %cst_93 = arith.constant dense<0.000000e+00> : vector<16xf32>
    %277 = vector.multi_reduction <add>, %276, %cst_93 [1] : vector<16x128xf32> to vector<16xf32>
    %278 = vector.shape_cast %277 : vector<16xf32> to vector<16x1xf32>
    %cst_94 = arith.constant 1.280000e+02 : f32
    %279 = vector.broadcast %cst_94 : f32 to vector<16x1xf32>
    %280 = arith.divf %278, %279 : vector<16x1xf32>
    %281 = vector.broadcast %273 : vector<16x1xf32> to vector<16x128xf32>
    %282 = arith.subf %269, %281 : vector<16x128xf32>
    %cst_95 = arith.constant 9.99999974E-6 : f32
    %283 = vector.broadcast %cst_95 : f32 to vector<16x1xf32>
    %284 = arith.addf %280, %283 : vector<16x1xf32>
    %285 = math.rsqrt %284 : vector<16x1xf32>
    %286 = vector.broadcast %285 : vector<16x1xf32> to vector<16x128xf32>
    %287 = arith.mulf %282, %286 : vector<16x128xf32>
    %288 = vector.broadcast %169 : vector<1x128xf32> to vector<16x128xf32>
    %289 = arith.mulf %287, %288 : vector<16x128xf32>
    %290 = vector.broadcast %170 : vector<1x128xf32> to vector<16x128xf32>
    %291 = arith.addf %289, %290 : vector<16x128xf32>
    %292 = vector.shape_cast %291 : vector<16x128xf32> to vector<2x8x128xf32>
    %c0_96 = arith.constant 0 : index
    %c0_97 = arith.constant 0 : index
    %c0_98 = arith.constant 0 : index
    %293 = vector.load %arg9[%c0_96, %c0_97, %c0_98] : memref<2x8x128xf32, #tpu.memory_space<vmem>>, vector<2x8x128xf32>
    tpu.vector_store %arg9[%c0_96, %c0_97, %c0_98], %292 {strides = array<i32>} : memref<2x8x128xf32, #tpu.memory_space<vmem>>, vector<2x8x128xf32>,
    return
  }
  func.func @transform_0(%arg0: i32, %arg1: memref<2xi32, #tpu.memory_space<smem>>) -> (i32, i32, i32) {
    %c0_i32 = arith.constant 0 : i32
    %c0_i32_0 = arith.constant 0 : i32
    %c0_i32_1 = arith.constant 0 : i32
    return %arg0, %c0_i32, %c0_i32_0 : i32, i32, i32
  }
  func.func @transform_1(%arg0: i32, %arg1: memref<2xi32, #tpu.memory_space<smem>>) -> (i32, i32, i32) {
    %c0_i32 = arith.constant 0 : i32
    %c0_i32_0 = arith.constant 0 : i32
    %c0_i32_1 = arith.constant 0 : i32
    return %arg0, %c0_i32, %c0_i32_0 : i32, i32, i32
  }
  func.func @transform_2(%arg0: i32, %arg1: memref<2xi32, #tpu.memory_space<smem>>) -> (i32, i32, i32) {
    %c0_i32 = arith.constant 0 : i32
    %c0_i32_0 = arith.constant 0 : i32
    %c0_i32_1 = arith.constant 0 : i32
    %c0_i32_2 = arith.constant 0 : i32
    return %c0_i32, %c0_i32_0, %c0_i32_1 : i32, i32, i32
  }
  func.func @transform_3(%arg0: i32, %arg1: memref<2xi32, #tpu.memory_space<smem>>) -> (i32, i32, i32) {
    %c0_i32 = arith.constant 0 : i32
    %c0_i32_0 = arith.constant 0 : i32
    %c0_i32_1 = arith.constant 0 : i32
    %c0_i32_2 = arith.constant 0 : i32
    return %c0_i32, %c0_i32_0, %c0_i32_1 : i32, i32, i32
  }
  func.func @transform_4(%arg0: i32, %arg1: memref<2xi32, #tpu.memory_space<smem>>) -> (i32, i32, i32) {
    %c0_i32 = arith.constant 0 : i32
    %c0_i32_0 = arith.constant 0 : i32
    %c0_i32_1 = arith.constant 0 : i32
    %c0_i32_2 = arith.constant 0 : i32
    return %c0_i32, %c0_i32_0, %c0_i32_1 : i32, i32, i32
  }
  func.func @transform_5(%arg0: i32, %arg1: memref<2xi32, #tpu.memory_space<smem>>) -> (i32, i32, i32) {
    %c0_i32 = arith.constant 0 : i32
    %c0_i32_0 = arith.constant 0 : i32
    %c0_i32_1 = arith.constant 0 : i32
    %c0_i32_2 = arith.constant 0 : i32
    return %c0_i32, %c0_i32_0, %c0_i32_1 : i32, i32, i32
  }
  func.func @transform_6(%arg0: i32, %arg1: memref<2xi32, #tpu.memory_space<smem>>) -> (i32, i32, i32) {
    %c0_i32 = arith.constant 0 : i32
    %c0_i32_0 = arith.constant 0 : i32
    %c0_i32_1 = arith.constant 0 : i32
    %c0_i32_2 = arith.constant 0 : i32
    return %c0_i32, %c0_i32_0, %c0_i32_1 : i32, i32, i32
  }
  func.func @transform_7(%arg0: i32, %arg1: memref<2xi32, #tpu.memory_space<smem>>) -> (i32, i32, i32) {
    %c0_i32 = arith.constant 0 : i32
    %c0_i32_0 = arith.constant 0 : i32
    %c0_i32_1 = arith.constant 0 : i32
    return %arg0, %c0_i32, %c0_i32_0 : i32, i32, i32
  }
}

</mosaic_0001>

<bundles_post_ra>
// kernel: tpu_custom_call.1
= control target key start
LH: loop header
LB: loop body
LE: loop exit
PB: predicated region body
PF: predicated region fallthrough
CT: control target
= control target key end

     0   :  { %s4479_s0 = inlined_call_operand.hbm [shape: s32[2], index: 0, kind: input, shape index: {}]   ;;  %s4480_s1 = inlined_call_operand.hbm [shape: f32[2,8,128], index: 1, kind: input, shape index: {}]   ;;  %s4481_s2 = inlined_call_operand.vmem [shape: f32[2,1,128], index: 2, kind: input, shape index: {}]   ;;  %s4482_s3 = inlined_call_operand.hbm [shape: bf16[2,128,384], index: 3, kind: input, shape index: {}]   ;;  %s4483_s4 = inlined_call_operand.hbm [shape: bf16[4,64,128], index: 4, kind: input, shape index: {}]   ;;  %s4484_s5 = inlined_call_operand.hbm [shape: bf16[2,128,256], index: 5, kind: input, shape index: {}]   ;;  %s4485_s6 = inlined_call_operand.hbm [shape: bf16[2,256,128], index: 6, kind: input, shape index: {}]   ;;  %s4486_s7 = inlined_call_operand.hbm [shape: f32[2,8,384], index: 7, kind: input, shape index: {}]   ;;  %s4487_s8 = inlined_call_operand.hbm [shape: f32[2,8,128], index: 8, kind: output, shape index: {}]  }
   0x1   :  { %s3805_s29 = scalar_lea.hbm %s4479_s0, 16 }
   0x2   :  { %p3806_p0 = scmp.ne.s32.totalorder %s4479_s0, %s3805_s29  ;;  %p3809_p1 = scmp.lt.u32.totalorder %s3805_s29, %s4479_s0 }
   0x4   :  { %p3811_p2 = pnand %p3809_p1, %p3806_p0 }
   0x6   :  { %3814 = shalt.err (!%p3811_p2)  }
   0x7   :  { %s3981_s12 = smov [#allocation3]  }
   0x8   :  { %14 = dma.hbm_to_smem %s4479_s0, 16, %s3981_s12, [#allocation2] }
   0x9   :  { %3969 = dma.done.wait [#allocation2], 16 }
   0xa   :  { %3970 = vsyncadd [#allocation2], 4294967280 }
   0xb   :  { %16 = sfence }
   0xc   :  { %17 = vsyncpa [#allocation5], 0 }
   0xd   :  { %18 = vsyncpa [#allocation8], 0 }
   0xe   :  { %19 = vsyncpa [#allocation11], 0 }
   0xf   :  { %20 = vsyncpa [#allocation14], 0 }
  0x10   :  { %21 = vsyncpa [#allocation6], 0  ;;  %s3982_s15 = smov [#allocation7]   ;;  %s3815_s19 = scalar_lea.hbm %s4482_s3, 6144 }
  0x11   :  { %s41_s16 = sshll.u32 %s3982_s15, 4  ;;  %p3816_p3 = scmp.ne.s32.totalorder %s4482_s3, %s3815_s19  ;;  %s42_s16 = int_to_ptr.vmem [resolvable:$true] %s41_s16 }
  0x12   :  { %p3819_p4 = scmp.lt.u32.totalorder %s3815_s19, %s4482_s3 }
  0x14   :  { %p3821_p5 = pnand %p3819_p4, %p3816_p3 }
  0x16   :  { %3824 = shalt.err (!%p3821_p5)
}
  0x17   :  { %s3825_s23 = scalar_lea.vmem %s42_s16, 6144  ;;  %p3830_p7 = scmp.lt.s32.totalorder %s42_s16, %s42_s16 }
  0x18   :  { %p3826_p6 = scmp.ne.s32.totalorder %s42_s16, %s3825_s23  ;;  %p3831_p8 = scmp.lt.s32.totalorder %s3825_s23, %s3825_s23 }
  0x1a   :  { %p3832_p9 = por %p3831_p8, %p3830_p7 }
  0x1c   :  { %p3833_p10 = pnand %p3832_p9, %p3826_p6 }
  0x1e   :  { %3836 = shalt.err (!%p3833_p10)
}
  0x1f   :  { %s3983_s24 = smov 192   ;;  %s3984_s25 = smov 12  }
  0x20   :  { %47 = dma.hbm_to_vmem [thread:$0]  %s4482_s3, 6144, %s42_s16, [#allocation8], %s3983_s24, %s3983_s24, %s3984_s25  }
  0x21   :  { %s3985_s28 = smov [#allocation10]   ;;  %s3986_s30 = smov [#allocation4]  }
  0x22   :  { %s65_s29 = sshll.u32 %s3985_s28, 4  ;;  %s27_s9 = sshll.u32 %s3986_s30, 4  ;;  %s66_s29 = int_to_ptr.vmem [resolvable:$true] %s65_s29  ;;  %s28_s9 = int_to_ptr.vmem [resolvable:$true] %s27_s9 }
  0x23   :  { %s3837_s12 = scalar_lea.hbm %s4484_s5, 4096 }
  0x24   :  { %p3838_p11 = scmp.ne.s32.totalorder %s4484_s5, %s3837_s12  ;;  %p3841_p12 = scmp.lt.u32.totalorder %s3837_s12, %s4484_s5 }
  0x26   :  { %p3843_p13 = pnand %p3841_p12, %p3838_p11 }
  0x28   :  { %3846 = shalt.err (!%p3843_p13)
}
  0x29   :  { %s3847_s3 = scalar_lea.vmem %s66_s29, 4096  ;;  %p3852_p1 = scmp.lt.s32.totalorder %s66_s29, %s66_s29 }
  0x2a   :  { %p3848_p0 = scmp.ne.s32.totalorder %s66_s29, %s3847_s3  ;;  %p3853_p2 = scmp.lt.s32.totalorder %s3847_s3, %s3847_s3 }
  0x2c   :  { %p3854_p3 = por %p3853_p2, %p3852_p1 }
  0x2e   :  { %p3855_p4 = pnand %p3854_p3, %p3848_p0 }
  0x30   :  { %3858 = shalt.err (!%p3855_p4)
}
  0x31   :  { %s3987_s16 = smov 128   ;;  %s3988_s18 = smov 8  }
  0x32   :  { %71 = dma.hbm_to_vmem [thread:$0]  %s4484_s5, 4096, %s66_s29, [#allocation11], %s3987_s16, %s3987_s16, %s3988_s18  }
  0x33   :  { %s3859_s22 = scalar_lea.hbm %s4480_s1, 256 }
  0x34   :  { %p3860_p5 = scmp.ne.s32.totalorder %s4480_s1, %s3859_s22  ;;  %p3863_p6 = scmp.lt.u32.totalorder %s3859_s22, %s4480_s1 }
  0x36   :  { %p3865_p7 = pnand %p3863_p6, %p3860_p5 }
  0x38   :  { %3868 = shalt.err (!%p3865_p7)
}
  0x39   :  { %s3869_s27 = scalar_lea.vmem %s28_s9, 256  ;;  %p3874_p9 = scmp.lt.s32.totalorder %s28_s9, %s28_s9 }
  0x3a   :  { %p3870_p8 = scmp.ne.s32.totalorder %s28_s9, %s3869_s27  ;;  %p3875_p10 = scmp.lt.s32.totalorder %s3869_s27, %s3869_s27 }
  0x3c   :  { %p3876_p11 = por %p3875_p10, %p3874_p9 }
  0x3e   :  { %p3877_p12 = pnand %p3876_p11, %p3870_p8 }
  0x40   :  { %3880 = shalt.err (!%p3877_p12)
}
  0x41   :  { %33 = dma.hbm_to_vmem [thread:$0]  %s4480_s1, 256, %s28_s9, [#allocation5], %s3987_s16, %s3987_s16, %s3988_s18  }
  0x42   :  { %s3989_s29 = smov [#allocation9]   ;;  %s3881_s12 = scalar_lea.hbm %s4483_s4, 2048 }
  0x43   :  { %s53_s30 = sshll.u32 %s3989_s29, 4  ;;  %p3882_p13 = scmp.ne.s32.totalorder %s4483_s4, %s3881_s12  ;;  %s54_s30 = int_to_ptr.vmem [resolvable:$true] %s53_s30 }
  0x44   :  { %p3885_p0 = scmp.lt.u32.totalorder %s3881_s12, %s4483_s4 }
  0x46   :  { %p3887_p1 = pnand %p3885_p0, %p3882_p13 }
  0x48   :  { %3890 = shalt.err (!%p3887_p1)
}
  0x49   :  { %s3891_s3 = scalar_lea.vmem %s54_s30, 2048  ;;  %p3896_p3 = scmp.lt.s32.totalorder %s54_s30, %s54_s30 }
  0x4a   :  { %p3892_p2 = scmp.ne.s32.totalorder %s54_s30, %s3891_s3  ;;  %p3897_p4 = scmp.lt.s32.totalorder %s3891_s3, %s3891_s3 }
  0x4c   :  { %p3898_p5 = por %p3897_p4, %p3896_p3 }
  0x4e   :  { %p3899_p6 = pnand %p3898_p5, %p3892_p2 }
  0x50   :  { %3902 = shalt.err (!%p3899_p6)
}
  0x51   :  { %s3990_s1 = smov 64   ;;  %s3991_s9 = smov 4  }
  0x52   :  { %59 = dma.hbm_to_vmem [thread:$0]  %s4483_s4, 2048, %s54_s30, [#allocation8], %s3990_s1, %s3990_s1, %s3991_s9  }
  0x53   :  { %s3992_s21 = smov [#allocation12]   ;;  %s3993_s22 = smov [#allocation13]  }
  0x54   :  { %s77_s0 = sshll.u32 %s3992_s21, 4  ;;  %s89_s23 = sshll.u32 %s3993_s22, 4  ;;  %s78_s0 = int_to_ptr.vmem [resolvable:$true] %s77_s0  ;;  %s4113_s23 = int_to_ptr.vmem [resolvable:$true] %s89_s23 }
  0x55   :  { %s3903_s26 = scalar_lea.hbm %s4485_s6, 4096 }
  0x56   :  { %p3904_p7 = scmp.ne.s32.totalorder %s4485_s6, %s3903_s26  ;;  %p3907_p8 = scmp.lt.u32.totalorder %s3903_s26, %s4485_s6 }
  0x58   :  { %p3909_p9 = pnand %p3907_p8, %p3904_p7 }
  0x5a   :  { %3912 = shalt.err (!%p3909_p9)
}
  0x5b   :  { %s3913_s4 = scalar_lea.vmem %s78_s0, 4096  ;;  %p3918_p11 = scmp.lt.s32.totalorder %s78_s0, %s78_s0 }
  0x5c   :  { %p3914_p10 = scmp.ne.s32.totalorder %s78_s0, %s3913_s4  ;;  %p3919_p12 = scmp.lt.s32.totalorder %s3913_s4, %s3913_s4 }
  0x5e   :  { %p3920_p13 = por %p3919_p12, %p3918_p11 }
  0x60   :  { %p3921_p0 = pnand %p3920_p13, %p3914_p10 }
  0x62   :  { %3924 = shalt.err (!%p3921_p0)
}
  0x63   :  { %83 = dma.hbm_to_vmem [thread:$0]  %s4485_s6, 4096, %s78_s0, [#allocation11], %s3990_s1, %s3990_s1, %s3991_s9  }
  0x64   :  { %s3925_s13 = scalar_lea.hbm %s4486_s7, 768 }
  0x65   :  { %p3926_p1 = scmp.ne.s32.totalorder %s4486_s7, %s3925_s13  ;;  %p3929_p2 = scmp.lt.u32.totalorder %s3925_s13, %s4486_s7 }
  0x67   :  { %p3931_p3 = pnand %p3929_p2, %p3926_p1 }
  0x69   :  { %3934 = shalt.err (!%p3931_p3)
}
  0x6a   :  { %s3935_s19 = scalar_lea.vmem %s4113_s23, 768  ;;  %p3940_p5 = scmp.lt.s32.totalorder %s4113_s23, %s4113_s23 }
  0x6b   :  { %p3936_p4 = scmp.ne.s32.totalorder %s4113_s23, %s3935_s19  ;;  %p3941_p6 = scmp.lt.s32.totalorder %s3935_s19, %s3935_s19 }
  0x6d   :  { %p3942_p7 = por %p3941_p6, %p3940_p5 }
  0x6f   :  { %p3943_p8 = pnand %p3942_p7, %p3936_p4 }
  0x71   :  { %3946 = shalt.err (!%p3943_p8)
}
  0x72   :  { %s3994_s6 = smov 384   ;;  %s3995_s9 = smov 24  }
  0x73   :  { %95 = dma.hbm_to_vmem [thread:$0]  %s4486_s7, 768, %s4113_s23, [#allocation14], %s3994_s6, %s3994_s6, %s3995_s9  }
  0x74   :  { %3971 = dma.done.wait [#allocation5], 256  }
  0x75   :  { %3972 = vsyncadd [#allocation5], 4294967040 }
  0x76   :  { %3973 = dma.done.wait [#allocation8], 8192  }
  0x77   :  { %3974 = vsyncadd [#allocation8], 4294959104 }
  0x78   :  { %3975 = dma.done.wait [#allocation11], 8192  }
  0x79   :  { %3976 = vsyncadd [#allocation11], 4294959104 }
  0x7a   :  { %3977 = dma.done.wait [#allocation14], 768  }
  0x7b   :  { %3978 = vsyncadd [#allocation14], 4294966528  ;;  %v3996_v0 = vmov 0   ;;  %v3997_v1 = vmov 0.0   ;;  %vm3998_vm0 = vmmov 0   ;;  %v115_v13 = vld [vmem:[#allocation4] sm:$0xff]  ;;  %v135_v35 = vlaneseq }
  0x7c   :  { %355 = vmatprep.mubr.bf16.mxu0 %v3996_v0  ;;  %3410 = vmatprep.subr.bf16.mxu1 %v3997_v1  ;;  %v3597_v2 = vld [vmem:[#allocation7 + $0x4] ss:$12 sps:$4 sm:$0xff]   ;;  %v3599_v3 = vld [vmem:[#allocation7] ss:$12 sps:$4 sm:$0xff]   ;;  %v3600_v4 = vld [vmem:[#allocation7 + $0x1c] ss:$12 sps:$4 sm:$0xff]  }
  0x7d   :  { %3426 = vmatprep.mubr.msk.bf16.mxu1 %vm3998_vm0, %v3997_v1  ;;  %323 = vmatprep.subr.bf16.mxu0 %v3597_v2  ;;  %v3602_v5 = vld [vmem:[#allocation7 + $0x18] ss:$12 sps:$4 sm:$0xff]   ;;  %v3603_v6 = vld [vmem:[#allocation7 + $0x34] ss:$12 sps:$4 sm:$0xff]   ;;  %v3605_v7 = vld [vmem:[#allocation7 + $0x30] ss:$12 sps:$4 sm:$0xff]  }
  0x7e   :  { %324 = vmatpush1.bf16.msra.mxu0 %v3599_v3  ;;  %v3606_v8 = vld [vmem:[#allocation7 + $0x4c] ss:$12 sps:$4 sm:$0xff]   ;;  %v3608_v9 = vld [vmem:[#allocation7 + $0x48] ss:$12 sps:$4 sm:$0xff]   ;;  %v3609_v10 = vld [vmem:[#allocation7 + $0x64] ss:$12 sps:$4 sm:$0xff]  }
  0x7f   :  { %325 = vmatprep.subr.bf16.mxu0 %v3600_v4  ;;  %v3611_v11 = vld [vmem:[#allocation7 + $0x60] ss:$12 sps:$4 sm:$0xff]   ;;  %v3621_v12 = vld [vmem:[#allocation7 + $0x8] ss:$12 sps:$4 sm:$0xff]   ;;  %v3614_v16 = vld [vmem:[#allocation7 + $0x78] ss:$12 sps:$4 sm:$0xff]  }
  0x80   :  { %3411 = vmatpush3.bf16.msra.mxu1 %v3621_v12  ;;  %v3622_v14 = vld [vmem:[#allocation7 + $0x20] ss:$12 sps:$4 sm:$0xff]   ;;  %v3612_v15 = vld [vmem:[#allocation7 + $0x7c] ss:$12 sps:$4 sm:$0xff]   ;;  %v117_v19 = vmul.f32 11.313708, %v115_v13 }
  0x81   :  { %3412 = vmatprep.subr.bf16.mxu1 %v3997_v1  ;;  %v116_v17 = vld [vmem:[#allocation4 + $0x8] sm:$0xff]  ;;  %v3615_v18 = vld [vmem:[#allocation7 + $0x94] ss:$12 sps:$4 sm:$0xff]   ;;  %v3137_v23 = vld [vmem:[%s4481_s2] ss:$0 sm:$0xff]  ;;  %v4175_v36 = vshrl.u32 %v135_v35, 7 }
  0x82   :  { %326 = vmatpush1.bf16.msra.mxu0 %v3602_v5  ;;  %v3623_v20 = vld [vmem:[#allocation7 + $0x38] ss:$12 sps:$4 sm:$0xff]   ;;  %v118_v21 = vmul.f32 11.313708, %v116_v17  ;;  %v3617_v22 = vld [vmem:[#allocation7 + $0x90] ss:$12 sps:$4 sm:$0xff]   ;;  %v4159_v29 = vadd.f32 %v3137_v23, %v117_v19 }
  0x83   :  { %327 = vmatprep.subr.bf16.mxu0 %v3603_v6  ;;  %v3138_v24 = vld [vmem:[%s4481_s2 + $0x1] ss:$0 sm:$0xff]  ;;  %v3624_v25 = vld [vmem:[#allocation7 + $0x50] ss:$12 sps:$4 sm:$0xff]   ;;  %v3618_v26 = vld [vmem:[#allocation7 + $0xac] ss:$12 sps:$4 sm:$0xff]  }
  0x84   :  { %3413 = vmatpush3.bf16.msra.mxu1 %v3622_v14  ;;  %v3620_v27 = vld [vmem:[#allocation7 + $0xa8] ss:$12 sps:$4 sm:$0xff]   ;;  %v4161_v30 = vadd.f32 %v3138_v24, %v118_v21  ;;  %v3626_v31 = vld [vmem:[#allocation7 + $0x80] ss:$12 sps:$4 sm:$0xff]   ;;  %v3627_v33 = vld [vmem:[#allocation7 + $0x98] ss:$12 sps:$4 sm:$0xff]  }
  0x85   :  { %3414 = vmatprep.subr.bf16.mxu1 %v3997_v1  ;;  %v3625_v28 = vld [vmem:[#allocation7 + $0x68] ss:$12 sps:$4 sm:$0xff]   ;;  %v3628_v34 = vld [vmem:[#allocation7 + $0xb0] ss:$12 sps:$4 sm:$0xff]   ;;  %v4178_v37 = vsub.s32 0, %v4175_v36  ;;  %v4182_v39 = vld [vmem:[#allocation13] sm:$0xff] }
  0x86   :  { %328 = vmatpush1.bf16.msra.mxu0 %v3605_v7  ;;  %v150_v32 = vpack.c.bf16 %v4161_v30, %v4159_v29  ;;  %v4180_v38 = vld [vmem:[#allocation13 + $0x8] sm:$0xff]  ;;  %vm407_vm1 = vcmask 523264   ;;  %v149_v49 = vld [vmem:[#allocation13 + $0x10] sm:$0xff]  ;;  %s138_s2 = sld [smem:[#allocation3]]  ;;  %s3139_s24 = sld [smem:[#allocation3 + $0x1]]  ;;  %v136_v58 = vand.u32 127, %v135_v35 }
  0x87   :  { %329 = vmatprep.subr.bf16.mxu0 %v3606_v8  ;;  %v190_v40 = vrot.slane %v4180_v38, %v4178_v37  ;;  %v186_v42 = vrot.slane %v4182_v39, %v4178_v37  ;;  %v194_v51 = vrot.slane %v149_v49, %v4178_v37  ;;  %vm564_vm4 = vcmask 64512  }
  0x88   :  { %3415 = vmatpush3.bf16.msra.mxu1 %v3623_v20 }
  0x89   :  { %3416 = vmatprep.subr.bf16.mxu1 %v3997_v1 }
  0x8a   :  { %330 = vmatpush1.bf16.msra.mxu0 %v3608_v9 }
  0x8b   :  { %331 = vmatprep.subr.bf16.mxu0 %v3609_v10 }
  0x8c   :  { %3417 = vmatpush3.bf16.msra.mxu1 %v3624_v25  ;;  %v139_v59 = vstv %s138_s2  ;;  %v142_v60 = vstv %s3139_s24 }
  0x8d   :  { %3418 = vmatprep.subr.bf16.mxu1 %v3997_v1  ;;  %vm143_vm2 = vcmp.ge.s32.totalorder %v136_v58, %v139_v59  ;;  %vm144_vm3 = vcmp.ge.s32.totalorder %v136_v58, %v142_v60 }
  0x8e   :  { %332 = vmatpush1.bf16.msra.mxu0 %v3611_v11  ;;  %v4210_v62 = vsel %vm143_vm2, -1e+09, %v3997_v1  ;;  %v4213_v4 = vsel %vm144_vm3, -1e+09, %v3997_v1 }
  0x8f   :  { %333 = vmatprep.subr.bf16.mxu0 %v3612_v15 }
  0x90   :  { %3419 = vmatpush3.bf16.msra.mxu1 %v3625_v28 }
  0x91   :  { %3420 = vmatprep.subr.bf16.mxu1 %v3997_v1 }
  0x92   :  { %334 = vmatpush1.bf16.msra.mxu0 %v3614_v16 }
  0x93   :  { %335 = vmatprep.subr.bf16.mxu0 %v3615_v18 }
  0x94   :  { %3421 = vmatpush3.bf16.msra.mxu1 %v3626_v31 }
  0x95   :  { %3422 = vmatprep.subr.bf16.mxu1 %v3997_v1 }
  0x96   :  { %336 = vmatpush1.bf16.msra.mxu0 %v3617_v22 }
  0x97   :  { %337 = vmatprep.subr.bf16.mxu0 %v3618_v26 }
  0x98   :  { %3423 = vmatpush3.bf16.msra.mxu1 %v3627_v33 }
  0x99   :  { %3424 = vmatprep.subr.bf16.mxu1 %v3997_v1 }
  0x9a   :  { %338 = vmatpush1.bf16.msra.mxu0 %v3620_v27 }
  0x9b   :  { %3430 = vmatprep.subr.mxu0 %v3997_v1 }
  0x9c   :  { %3425 = vmatpush3.bf16.msra.mxu1 %v3628_v34 }
  0x9d   :  { %356 = vmatmul.mubr.bf16.vlgmr.msra.gmra.mrb[0].mxu0 %v150_v32  ;;  %3435 = vmatprep.subr.mxu1 %v3997_v1 }
  0x9e   :  { %3432 = vmatprep.mubr.msk.f32.mxu0 %vm3998_vm0, %v3997_v1 }
  0x9f   :  { %3427 = vmatmul.mubr.bf16.vlgmr.msra.gmra.mrb[0].mxu1 %v150_v32 }
  0xa0   :  { %3437 = vmatprep.mubr.msk.f32.mxu1 %vm3998_vm0, %v3997_v1 }
 0x170   :  { %v357_v41 = vpop.f32.mrb[0].mxu0 }
 0x171   :  { %v359_v43 = vpop.f32.mrb[1].mxu0  ;;  %v358_v48 = vadd.f32 %v357_v41, %v186_v42 }
 0x172   :  { %v360_v44 = vadd.f32 %v359_v43, %v190_v40  ;;  %v361_v45 = vpop.f32.mrb[2].mxu0  ;;  %v400_v52 = vpop.f32.mrb[0].mxu1 }
 0x173   :  { %v363_v46 = vpop.f32.mrb[3].mxu0  ;;  %v362_v50 = vadd.f32 %v361_v45, %v186_v42  ;;  %v4201_v53 = vadd.f32 %v400_v52, %v194_v51  ;;  %v3428_v54 = vpop.f32.mrb[1].mxu1 }
 0x174   :  { %v364_v47 = vadd.f32 %v363_v46, %v190_v40  ;;  %3431 = vmatpush3.xpose.msk.msra.mxu0 %vm407_vm1, %v360_v44  ;;  %v403_v55 = vpop.f32.mrb[2].mxu1 }
 0x175   :  { %3440 = vmatprep.subr.mxu0 %v3997_v1  ;;  %v4203_v56 = vadd.f32 %v403_v55, %v194_v51  ;;  %v3429_v57 = vpop.f32.mrb[3].mxu1 }
 0x176   :  { %822 = vrot.lane.b32.xlu1 %v364_v47, %s3990_s1  ;;  %3436 = vmatpush3.xpose.msk.msra.mxu1 %vm407_vm1, %v364_v47 }
 0x177   :  { %3433 = vmatmul.mubr.msk.f32.vlgmr.msra.gmra.mrb[4].mxu0 %vm407_vm1, %v358_v48  ;;  %3445 = vmatprep.subr.mxu1 %v3997_v1 }
 0x178   :  { %3442 = vmatprep.mubr.msk.f32.mxu0 %vm3998_vm0, %v3997_v1  ;;  %3441 = vmatpush3.msra.mxu0 %v4201_v53 }
 0x179   :  { %3438 = vmatmul.mubr.msk.f32.vlgmr.msra.gmra.mrb[4].mxu1 %vm407_vm1, %v362_v50  ;;  %3450 = vmatprep.subr.mxu0 %v3997_v1 }
 0x17a   :  { %742 = vrot.lane.b32.xlu1 %v358_v48, %s3990_s1  ;;  %3447 = vmatprep.mubr.msk.f32.mxu1 %vm3998_vm0, %v3997_v1 }
 0x17b   :  { %3446 = vmatpush3.msra.mxu1 %v4203_v56 }
 0x17c   :  { %3455 = vmatprep.subr.mxu1 %v3997_v1 }
 0x1e8   :  { %v823_v21 = vpop.permute.xlu1 %822 }
 0x1ec   :  { %v743_v22 = vpop.permute.xlu1 %742 }
 0x24a   :  { %v480_v61 = vpop.f32.mrb[4].mxu0 }
 0x24b   :  { %v560_v63 = vmul.f32 0.125, %v480_v61  ;;  %v3434_v2 = vpop.f32.mrb[5].mxu0 }
 0x24c   :  { %v556_v3 = vpop.f32.mrb[4].mxu1 }
 0x24d   :  { %v561_v5 = vmul.f32 0.125, %v556_v3  ;;  %v3439_v6 = vpop.f32.mrb[5].mxu1  ;;  %v562_v7 = vadd.f32 %v560_v63, %v4210_v62 }
 0x24f   :  { %v565_v8 = vsel %vm564_vm4, %v562_v7, -inf  ;;  %v563_v9 = vadd.f32 %v561_v5, %v4213_v4 }
 0x250   :  { %566 = vmax.xlane.f32.xlu0 %v565_v8  ;;  %v3633_v8 = vld [vmem:[#allocation9 + $0x20] sm:$0xff]  }
 0x251   :  { %v568_v10 = vsel %vm564_vm4, %v563_v9, -inf }
 0x254   :  { %569 = vmax.xlane.f32.xlu0 %v568_v10 }
 0x26a   :  { %744 = vrot.lane.b32.xlu0 %v360_v44, %s3990_s1 }
 0x2dd   :  { %v567_v11 = vpop.xlane.xlu0 %566 }
 0x2de   :  { %v571_v12 = vsub.f32 %v562_v7, %v567_v11  ;;  %v3629_v11 = vld [vmem:[#allocation9] sm:$0xff]  }
 0x2e0   :  { %v573_v13 = vmul.f32 1.442695, %v571_v12  ;;  %v3634_v12 = vld [vmem:[#allocation9 + $0x28] sm:$0xff]  }
 0x2e1   :  { %v570_v14 = vpop.xlane.xlu0 %569 }
 0x2e2   :  { %3757 = vpow2.f32 %v573_v13  ;;  %v572_v15 = vsub.f32 %v563_v9, %v570_v14  ;;  %v3630_v13 = vld [vmem:[#allocation9 + $0x8] sm:$0xff]   ;;  %v3631_v14 = vld [vmem:[#allocation9 + $0x10] sm:$0xff]  }
 0x2e4   :  { %v575_v16 = vmul.f32 1.442695, %v572_v15  ;;  %v3632_v15 = vld [vmem:[#allocation9 + $0x18] sm:$0xff]  }
 0x2e5   :  { %v745_v27 = vpop.permute.xlu0 %744 }
 0x2e6   :  { %3759 = vpow2.f32 %v575_v16  ;;  %v3635_v16 = vld [vmem:[#allocation9 + $0x30] sm:$0xff]  }
 0x2ec   :  { %v3758_v17 = vpop.eup %3757 }
 0x2ed   :  { %v577_v18 = vsel %vm564_vm4, %v3758_v17, 0.0 }
 0x2ee   :  { %578 = vadd.xlane.f32.xlu1 %v577_v18 }
 0x2f0   :  { %v3760_v19 = vpop.eup %3759 }
 0x2f1   :  { %v580_v20 = vsel %vm564_vm4, %v3760_v19, 0.0 }
 0x2f2   :  { %581 = vadd.xlane.f32.xlu1 %v580_v20 }
 0x303   :  { %820 = vrot.lane.b32.xlu1 %v362_v50, %s3990_s1 }
 0x37b   :  { %v579_v23 = vpop.xlane.xlu1 %578 }
 0x37c   :  { %3761 = vrcp.f32 %v579_v23 }
 0x37f   :  { %v582_v24 = vpop.xlane.xlu1 %581 }
 0x380   :  { %3763 = vrcp.f32 %v582_v24 }
 0x383   :  { %v821_v32 = vpop.permute.xlu1 %820 }
 0x386   :  { %v3762_v25 = vpop.eup %3761 }
 0x387   :  { %v585_v26 = vmul.f32 %v3762_v25, %v3758_v17  ;;  %v3636_v17 = vld [vmem:[#allocation9 + $0x38] sm:$0xff]  }
 0x389   :  { %3443 = vmatmul.mubr.msk.f32.vlgmr.msra.gmra.mrb[6].mxu0 %vm564_vm4, %v585_v26 }
 0x38a   :  { %v3764_v28 = vpop.eup %3763  ;;  %3451 = vmatpush3.xpose.msk.msra.mxu0 %vm407_vm1, %v745_v27  ;;  %3452 = vmatprep.mubr.msk.f32.mxu0 %vm3998_vm0, %v3997_v1  ;;  %v1226_v27 = vsub.s32 1, %v4175_v36 }
 0x38b   :  { %v586_v31 = vmul.f32 %v3764_v28, %v3760_v19  ;;  %3460 = vmatprep.subr.mxu0 %v3997_v1 }
 0x38c   :  { %v1227_v28 = vrot.slane %v4182_v39, %v1226_v27 }
 0x38d   :  { %3448 = vmatmul.mubr.msk.f32.vlgmr.msra.gmra.mrb[6].mxu1 %vm564_vm4, %v586_v31  ;;  %3453 = vmatmul.mubr.msk.f32.vlgmr.msra.gmra.mrb[8].mxu0 %vm407_vm1, %v743_v22 }
 0x38e   :  { %3456 = vmatpush3.xpose.msk.msra.mxu1 %vm407_vm1, %v823_v21  ;;  %3457 = vmatprep.mubr.msk.f32.mxu1 %vm3998_vm0, %v3997_v1 }
 0x38f   :  { %3465 = vmatprep.subr.mxu1 %v3997_v1  ;;  %3462 = vmatprep.mubr.msk.f32.mxu0 %vm3998_vm0, %v3997_v1 }
 0x391   :  { %3458 = vmatmul.mubr.msk.f32.vlgmr.msra.gmra.mrb[8].mxu1 %vm407_vm1, %v821_v32 }
 0x392   :  { %3467 = vmatprep.mubr.msk.f32.mxu1 %vm3998_vm0, %v3997_v1 }
 0x45c   :  { %v4239_v33 = vpop.f32.mrb[6].mxu0 }
 0x45d   :  { %v3444_v34 = vpop.f32.mrb[7].mxu0 }
 0x460   :  { %v4241_v35 = vpop.f32.mrb[6].mxu1  ;;  %v816_v40 = vpop.f32.mrb[8].mxu0 }
 0x461   :  { %v733_v41 = vpack.c.bf16 %v4241_v35, %v4239_v33  ;;  %v898_v42 = vmul.f32 0.125, %v816_v40  ;;  %v3449_v43 = vpop.f32.mrb[7].mxu1  ;;  %v3454_v44 = vpop.f32.mrb[9].mxu0 }
 0x463   :  { %v900_v45 = vadd.f32 %v898_v42, %v4210_v62 }
 0x464   :  { %v894_v46 = vpop.f32.mrb[8].mxu1 }
 0x465   :  { %v899_v47 = vmul.f32 0.125, %v894_v46  ;;  %v3459_v48 = vpop.f32.mrb[9].mxu1  ;;  %v902_v49 = vsel %vm564_vm4, %v900_v45, -inf  ;;  %v3639_v46 = vld [vmem:[#allocation10 + $0x4] ss:$8 sps:$4 sm:$0xff]  }
 0x466   :  { %903 = vmax.xlane.f32.xlu0 %v902_v49  ;;  %v3640_v48 = vld [vmem:[#allocation10 + $0x10] ss:$8 sps:$4 sm:$0xff]  }
 0x467   :  { %v901_v50 = vadd.f32 %v899_v47, %v4213_v4  ;;  %v3642_v47 = vld [vmem:[#allocation10 + $0x14] ss:$8 sps:$4 sm:$0xff]  }
 0x469   :  { %v905_v51 = vsel %vm564_vm4, %v901_v50, -inf }
 0x46a   :  { %906 = vmax.xlane.f32.xlu1 %v905_v51 }
 0x47b   :  { %1002 = vrot.lane.b32.xlu1 %v4203_v56, %s3990_s1 }
 0x4f3   :  { %v904_v52 = vpop.xlane.xlu0 %903 }
 0x4f4   :  { %v908_v54 = vsub.f32 %v900_v45, %v904_v52  ;;  %v3637_v45 = vld [vmem:[#allocation10] ss:$8 sps:$4 sm:$0xff]  }
 0x4f6   :  { %v910_v55 = vmul.f32 1.442695, %v908_v54 }
 0x4f7   :  { %v907_v57 = vpop.xlane.xlu1 %906 }
 0x4f8   :  { %3765 = vpow2.f32 %v910_v55  ;;  %v909_v58 = vsub.f32 %v901_v50, %v907_v57  ;;  %v3645_v57 = vld [vmem:[#allocation10 + $0x24] ss:$8 sps:$4 sm:$0xff]  }
 0x4fa   :  { %v912_v59 = vmul.f32 1.442695, %v909_v58  ;;  %v3643_v58 = vld [vmem:[#allocation10 + $0x20] ss:$8 sps:$4 sm:$0xff]  }
 0x4fb   :  { %v1003_v60 = vpop.permute.xlu1 %1002 }
 0x4fc   :  { %3767 = vpow2.f32 %v912_v59  ;;  %3466 = vmatpush3.msra.mxu1 %v1003_v60  ;;  %v3648_v59 = vld [vmem:[#allocation10 + $0x34] ss:$8 sps:$4 sm:$0xff]   ;;  %v3646_v60 = vld [vmem:[#allocation10 + $0x30] ss:$8 sps:$4 sm:$0xff]  }
 0x4fd   :  { %3482 = vmatprep.subr.bf16.mxu1 %v3997_v1 }
 0x502   :  { %v3766_v61 = vpop.eup %3765 }
 0x503   :  { %v914_v63 = vsel %vm564_vm4, %v3766_v61, 0.0 }
 0x504   :  { %915 = vadd.xlane.f32.xlu0 %v914_v63  ;;  %v3649_v63 = vld [vmem:[#allocation10 + $0x40] ss:$8 sps:$4 sm:$0xff]  }
 0x506   :  { %v3768_v2 = vpop.eup %3767 }
 0x507   :  { %v917_v3 = vsel %vm564_vm4, %v3768_v2, 0.0 }
 0x508   :  { %918 = vadd.xlane.f32.xlu0 %v917_v3  ;;  %v3652_v3 = vld [vmem:[#allocation10 + $0x50] ss:$8 sps:$4 sm:$0xff]  }
 0x51e   :  { %925 = vrot.lane.b32.xlu0 %v4201_v53, %s3990_s1 }
 0x591   :  { %v916_v56 = vpop.xlane.xlu0 %915 }
 0x592   :  { %3769 = vrcp.f32 %v916_v56  ;;  %v3657_v56 = vld [vmem:[#allocation10 + $0x64] ss:$8 sps:$4 sm:$0xff]  }
 0x595   :  { %v919_v5 = vpop.xlane.xlu0 %918 }
 0x596   :  { %3771 = vrcp.f32 %v919_v5  ;;  %v3655_v5 = vld [vmem:[#allocation10 + $0x60] ss:$8 sps:$4 sm:$0xff]  }
 0x599   :  { %v926_v6 = vpop.permute.xlu0 %925 }
 0x59a   :  { %3461 = vmatpush3.msra.mxu0 %v926_v6  ;;  %v3660_v6 = vld [vmem:[#allocation10 + $0x74] ss:$8 sps:$4 sm:$0xff]  }
 0x59b   :  { %3470 = vmatprep.subr.bf16.mxu0 %v3997_v1 }
 0x59c   :  { %v3770_v7 = vpop.eup %3769 }
 0x59d   :  { %v922_v9 = vmul.f32 %v3770_v7, %v3766_v61  ;;  %v3651_v61 = vld [vmem:[#allocation10 + $0x44] ss:$8 sps:$4 sm:$0xff]   ;;  %v3658_v7 = vld [vmem:[#allocation10 + $0x70] ss:$8 sps:$4 sm:$0xff]  }
 0x59f   :  { %3463 = vmatmul.mubr.msk.f32.vlgmr.msra.gmra.mrb[10].mxu0 %vm564_vm4, %v922_v9  ;;  %v3662_v9 = vld [vmem:[#allocation12] sm:$0xff]  }
 0x5a0   :  { %v3772_v10 = vpop.eup %3771  ;;  %3471 = vmatpush3.bf16.msra.mxu0 %v3633_v8  ;;  %3478 = vmatprep.mubr.msk.bf16.mxu0 %vm3998_vm0, %v3997_v1  ;;  %v3661_v8 = vld [vmem:[#allocation12 + $0x40] sm:$0xff]  }
 0x5a1   :  { %v923_v53 = vmul.f32 %v3772_v10, %v3768_v2  ;;  %3472 = vmatprep.subr.bf16.mxu0 %v3997_v1  ;;  %v3654_v2 = vld [vmem:[#allocation10 + $0x54] ss:$8 sps:$4 sm:$0xff]   ;;  %v3663_v10 = vld [vmem:[#allocation12 + $0x48] sm:$0xff]  }
 0x5a3   :  { %3468 = vmatmul.mubr.msk.f32.vlgmr.msra.gmra.mrb[10].mxu1 %vm564_vm4, %v923_v53  ;;  %v3665_v53 = vld [vmem:[#allocation12 + $0x50] sm:$0xff]  }
 0x5a4   :  { %3483 = vmatpush3.bf16.msra.mxu1 %v3629_v11  ;;  %3490 = vmatprep.mubr.msk.bf16.mxu1 %vm3998_vm0, %v3997_v1  ;;  %v3664_v11 = vld [vmem:[#allocation12 + $0x8] sm:$0xff]  }
 0x5a5   :  { %3484 = vmatprep.subr.bf16.mxu1 %v3997_v1  ;;  %3473 = vmatpush3.bf16.msra.mxu0 %v3634_v12  ;;  %v3666_v12 = vld [vmem:[#allocation12 + $0x10] sm:$0xff]  }
 0x5a6   :  { %3474 = vmatprep.subr.bf16.mxu0 %v3997_v1 }
 0x5a8   :  { %3485 = vmatpush3.bf16.msra.mxu1 %v3630_v13  ;;  %v3667_v13 = vld [vmem:[#allocation12 + $0x58] sm:$0xff]  }
 0x5a9   :  { %3486 = vmatprep.subr.bf16.mxu1 %v3997_v1  ;;  %3475 = vmatpush3.bf16.msra.mxu0 %v3635_v16  ;;  %v3670_v16 = vld [vmem:[#allocation12 + $0x20] sm:$0xff]  }
 0x5aa   :  { %3476 = vmatprep.subr.bf16.mxu0 %v3997_v1 }
 0x5ac   :  { %3487 = vmatpush3.bf16.msra.mxu1 %v3631_v14  ;;  %v3668_v14 = vld [vmem:[#allocation12 + $0x18] sm:$0xff]  }
 0x5ad   :  { %3488 = vmatprep.subr.bf16.mxu1 %v3997_v1  ;;  %3477 = vmatpush3.bf16.msra.mxu0 %v3636_v17  ;;  %v3671_v17 = vld [vmem:[#allocation12 + $0x68] sm:$0xff]  }
 0x5ae   :  { %1372 = vmatprep.subr.bf16.mxu0 %v3639_v46  ;;  %v3674_v46 = vld [vmem:[#allocation12 + $0x30] sm:$0xff]  }
 0x5b0   :  { %3489 = vmatpush3.bf16.msra.mxu1 %v3632_v15  ;;  %v3669_v15 = vld [vmem:[#allocation12 + $0x60] sm:$0xff]  }
 0x5b1   :  { %3331 = vmatprep.subr.bf16.mxu1 %v3661_v8 }
 0x5b3   :  { %3491 = vmatmul.mubr.msk.bf16.vlgmr.msra.gmra.mrb[12].mxu1 %vm407_vm1, %v733_v41 }
 0x5b4   :  { %3332 = vmatpush3.bf16.msra.mxu1 %v3662_v9 }
 0x5b5   :  { %3333 = vmatprep.subr.bf16.mxu1 %v3663_v10 }
 0x5b8   :  { %3334 = vmatpush3.bf16.msra.mxu1 %v3664_v11 }
 0x5b9   :  { %3335 = vmatprep.subr.bf16.mxu1 %v3665_v53 }
 0x5bc   :  { %3336 = vmatpush3.bf16.msra.mxu1 %v3666_v12 }
 0x5bd   :  { %3337 = vmatprep.subr.bf16.mxu1 %v3667_v13 }
 0x5c0   :  { %3338 = vmatpush3.bf16.msra.mxu1 %v3668_v14 }
 0x5c1   :  { %3339 = vmatprep.subr.bf16.mxu1 %v3669_v15  ;;  %v3677_v15 = vld [vmem:[#allocation7 + $0xc0] ss:$12 sps:$4 sm:$0xff]  }
 0x5c4   :  { %3340 = vmatpush3.bf16.msra.mxu1 %v3670_v16  ;;  %v3679_v16 = vld [vmem:[#allocation7 + $0xc4] ss:$12 sps:$4 sm:$0xff]  }
 0x5c5   :  { %3341 = vmatprep.subr.bf16.mxu1 %v3671_v17  ;;  %v3680_v17 = vld [vmem:[#allocation7 + $0xc8] ss:$12 sps:$4 sm:$0xff]  }
 0x672   :  { %v997_v18 = vpop.f32.mrb[10].mxu0 }
 0x673   :  { %v3464_v19 = vpop.f32.mrb[11].mxu0 }
 0x676   :  { %v1074_v20 = vpop.f32.mrb[10].mxu1 }
 0x677   :  { %v1078_v21 = vpack.c.bf16 %v1074_v20, %v997_v18  ;;  %v3469_v22 = vpop.f32.mrb[11].mxu1 }
 0x679   :  { %3479 = vmatmul.mubr.msk.bf16.vlgmr.msra.gmra.mrb[12].mxu0 %vm407_vm1, %v1078_v21 }
 0x67a   :  { %1404 = vmatprep.mubr.bf16.mxu0 %v3996_v0  ;;  %1373 = vmatpush1.bf16.msra.mxu0 %v3637_v45  ;;  %v3673_v45 = vld [vmem:[#allocation12 + $0x70] sm:$0xff]  }
 0x67b   :  { %1374 = vmatprep.subr.bf16.mxu0 %v3642_v47  ;;  %v3675_v47 = vld [vmem:[#allocation12 + $0x78] sm:$0xff]  }
 0x67e   :  { %1375 = vmatpush1.bf16.msra.mxu0 %v3640_v48  ;;  %v3676_v48 = vld [vmem:[#allocation12 + $0x38] sm:$0xff]  }
 0x67f   :  { %1376 = vmatprep.subr.bf16.mxu0 %v3645_v57 }
 0x682   :  { %1377 = vmatpush1.bf16.msra.mxu0 %v3643_v58 }
 0x683   :  { %1378 = vmatprep.subr.bf16.mxu0 %v3648_v59 }
 0x686   :  { %v1217_v23 = vpop.f32.mrb[12].mxu1  ;;  %1379 = vmatpush1.bf16.msra.mxu0 %v3646_v60 }
 0x687   :  { %v3492_v24 = vpop.f32.mrb[13].mxu1  ;;  %1380 = vmatprep.subr.bf16.mxu0 %v3651_v61 }
 0x688   :  { %v1220_v25 = vpop.f32.mrb[14].mxu1  ;;  %v1257_v24 = vsub.s32 4, %v4175_v36 }
 0x689   :  { %v3493_v26 = vpop.f32.mrb[15].mxu1 }
 0x68a   :  { %1381 = vmatpush1.bf16.msra.mxu0 %v3649_v63  ;;  %v1263_v26 = vsub.s32 5, %v4175_v36 }
 0x68b   :  { %1382 = vmatprep.subr.bf16.mxu0 %v3654_v2 }
 0x68e   :  { %1383 = vmatpush1.bf16.msra.mxu0 %v3652_v3 }
 0x68f   :  { %1384 = vmatprep.subr.bf16.mxu0 %v3657_v56 }
 0x692   :  { %1385 = vmatpush1.bf16.msra.mxu0 %v3655_v5 }
 0x693   :  { %1386 = vmatprep.subr.bf16.mxu0 %v3660_v6 }
 0x696   :  { %1387 = vmatpush1.bf16.msra.mxu0 %v3658_v7 }
 0x697   :  { %1808 = vmatprep.subr.bf16.mxu0 %v3679_v16  ;;  %v1633_v16 = vld [vmem:[#allocation13 + $0x28] sm:$0xff] }
 0x74c   :  { %v1149_v31 = vpop.f32.mrb[12].mxu0 }
 0x74d   :  { %v1218_v32 = vadd.f32 %v1217_v23, %v1149_v31  ;;  %v3480_v33 = vpop.f32.mrb[13].mxu0 }
 0x74e   :  { %v1152_v34 = vpop.f32.mrb[14].mxu0 }
 0x74f   :  { %v1228_v35 = vadd.f32 %v1227_v28, %v1218_v32  ;;  %v1221_v40 = vadd.f32 %v1220_v25, %v1152_v34  ;;  %v3481_v41 = vpop.f32.mrb[15].mxu0  ;;  %v1258_v25 = vrot.slane %v4182_v39, %v1257_v24 }
 0x751   :  { %v1229_v42 = vadd.f32 %v1227_v28, %v1221_v40  ;;  %v1230_v43 = vadd.f32 %v1228_v35, %v4159_v29  ;;  %v1264_v35 = vrot.slane %v4182_v39, %v1263_v26 }
 0x753   :  { %1232 = vadd.xlane.f32.xlu1 %v1230_v43  ;;  %v1231_v44 = vadd.f32 %v1229_v42, %v4161_v30 }
 0x755   :  { %1234 = vadd.xlane.f32.xlu0 %v1231_v44 }
 0x7e0   :  { %v1233_v49 = vpop.xlane.xlu1 %1232 }
 0x7e1   :  { %v1237_v50 = vmul.f32 0.0078125, %v1233_v49  ;;  %v4302_v49 = vsub.s32 2, %v4175_v36 }
 0x7e2   :  { %v1235_v51 = vpop.xlane.xlu0 %1234 }
 0x7e3   :  { %v4281_v52 = vsub.f32 %v1230_v43, %v1237_v50  ;;  %v1238_v54 = vmul.f32 0.0078125, %v1235_v51  ;;  %v1287_v50 = vrot.slane %v4182_v39, %v4302_v49  ;;  %v1291_v51 = vrot.slane %v4180_v38, %v4302_v49 }
 0x7e4   :  { %v1455_v38 = vsub.s32 3, %v4175_v36 }
 0x7e5   :  { %v4283_v55 = vsub.f32 %v1231_v44, %v1238_v54  ;;  %v1241_v29 = vmul.f32 %v4281_v52, %v4281_v52  ;;  %v3672_v44 = vld [vmem:[#allocation12 + $0x28] sm:$0xff]  }
 0x7e6   :  { %3342 = vmatpush3.bf16.msra.mxu1 %v3672_v44  ;;  %v1456_v6 = vrot.slane %v4182_v39, %v1455_v38  ;;  %v3695_v44 = vld [vmem:[#allocation7 + $0x124] ss:$12 sps:$4 sm:$0xff]  }
 0x7e7   :  { %1243 = vadd.xlane.f32.xlu0 %v1241_v29  ;;  %v1242_v30 = vmul.f32 %v4283_v55, %v4283_v55  ;;  %3343 = vmatprep.subr.bf16.mxu1 %v3673_v45  ;;  %v3693_v45 = vld [vmem:[#allocation7 + $0x120] ss:$12 sps:$4 sm:$0xff]  }
 0x7e9   :  { %1245 = vadd.xlane.f32.xlu1 %v1242_v30 }
 0x7ea   :  { %3344 = vmatpush3.bf16.msra.mxu1 %v3674_v46  ;;  %v3696_v46 = vld [vmem:[#allocation7 + $0x128] ss:$12 sps:$4 sm:$0xff]  }
 0x7eb   :  { %3345 = vmatprep.subr.bf16.mxu1 %v3675_v47  ;;  %v3699_v47 = vld [vmem:[#allocation7 + $0x13c] ss:$12 sps:$4 sm:$0xff]  }
 0x7ee   :  { %3346 = vmatpush3.bf16.msra.mxu1 %v3676_v48  ;;  %v3697_v48 = vld [vmem:[#allocation7 + $0x138] ss:$12 sps:$4 sm:$0xff]  }
 0x7ef   :  { %3494 = vmatprep.subr.bf16.mxu1 %v3997_v1 }
 0x874   :  { %v1244_v18 = vpop.xlane.xlu0 %1243 }
 0x875   :  { %v1247_v19 = vmul.f32 0.0078125, %v1244_v18  ;;  %v3683_v18 = vld [vmem:[#allocation7 + $0xdc] ss:$12 sps:$4 sm:$0xff]  }
 0x876   :  { %v1246_v20 = vpop.xlane.xlu1 %1245 }
 0x877   :  { %v1249_v21 = vadd.f32 1e-05, %v1247_v19  ;;  %v1248_v22 = vmul.f32 0.0078125, %v1246_v20  ;;  %v3684_v19 = vld [vmem:[#allocation7 + $0xe0] ss:$12 sps:$4 sm:$0xff]  }
 0x878   :  { %v3681_v20 = vld [vmem:[#allocation7 + $0xd8] ss:$12 sps:$4 sm:$0xff]  }
 0x879   :  { %3773 = vrsqrt.f32 %v1249_v21  ;;  %v1250_v23 = vadd.f32 1e-05, %v1248_v22 }
 0x87b   :  { %3775 = vrsqrt.f32 %v1250_v23 }
 0x883   :  { %v3774_v28 = vpop.eup %3773 }
 0x884   :  { %v1253_v31 = vmul.f32 %v3774_v28, %v4281_v52 }
 0x885   :  { %v3776_v32 = vpop.eup %3775 }
 0x886   :  { %v1254_v33 = vmul.f32 %v3776_v32, %v4283_v55  ;;  %v1259_v34 = vmul.f32 %v1258_v25, %v1253_v31 }
 0x888   :  { %v1260_v40 = vmul.f32 %v1258_v25, %v1254_v33  ;;  %v1265_v41 = vadd.f32 %v1264_v35, %v1259_v34  ;;  %v3687_v34 = vld [vmem:[#allocation7 + $0xf4] ss:$12 sps:$4 sm:$0xff]  }
 0x88a   :  { %v1266_v42 = vadd.f32 %v1264_v35, %v1260_v40  ;;  %v3685_v35 = vld [vmem:[#allocation7 + $0xf0] ss:$12 sps:$4 sm:$0xff]   ;;  %v3688_v40 = vld [vmem:[#allocation7 + $0xf8] ss:$12 sps:$4 sm:$0xff]  }
 0x88c   :  { %v1267_v43 = vpack.c.bf16 %v1266_v42, %v1265_v41 }
 0x88e   :  { %1405 = vmatmul.mubr.bf16.vlgmr.msra.gmra.mrb[16].mxu0 %v1267_v43  ;;  %v3692_v43 = vld [vmem:[#allocation7 + $0x110] ss:$12 sps:$4 sm:$0xff]  }
 0x88f   :  { %1840 = vmatprep.mubr.bf16.mxu0 %v3996_v0  ;;  %1809 = vmatpush1.bf16.msra.mxu0 %v3677_v15  ;;  %v4343_v15 = vld [vmem:[#allocation13 + $0x18] sm:$0xff] }
 0x890   :  { %1810 = vmatprep.subr.bf16.mxu0 %v3683_v18 }
 0x893   :  { %1811 = vmatpush1.bf16.msra.mxu0 %v3681_v20 }
 0x894   :  { %1812 = vmatprep.subr.bf16.mxu0 %v3687_v34 }
 0x897   :  { %1813 = vmatpush1.bf16.msra.mxu0 %v3685_v35 }
 0x961   :  { %v1406_v52 = vpop.f32.mrb[16].mxu0 }
 0x962   :  { %v1407_v54 = vadd.f32 %v1406_v52, %v1287_v50  ;;  %v1408_v55 = vpop.f32.mrb[17].mxu0  ;;  %v3701_v52 = vld [vmem:[#allocation7 + $0x150] ss:$12 sps:$4 sm:$0xff]  }
 0x963   :  { %v1409_v29 = vadd.f32 %v1408_v55, %v1291_v51  ;;  %v1410_v30 = vpop.f32.mrb[18].mxu0  ;;  %v3707_v55 = vld [vmem:[#allocation7 + $0x16c] ss:$12 sps:$4 sm:$0xff]  }
 0x964   :  { %v1411_v57 = vadd.f32 %v1410_v30, %v1287_v50  ;;  %v1412_v58 = vpop.f32.mrb[19].mxu0  ;;  %v1415_v60 = vmax.f32 %v1407_v54, 0.0  ;;  %v3700_v50 = vld [vmem:[#allocation7 + $0x140] ss:$12 sps:$4 sm:$0xff]   ;;  %v3704_v54 = vld [vmem:[#allocation7 + $0x158] ss:$12 sps:$4 sm:$0xff]  }
 0x965   :  { %v1413_v59 = vadd.f32 %v1412_v58, %v1291_v51  ;;  %v1416_v63 = vmax.f32 %v1409_v29, 0.0  ;;  %v3703_v51 = vld [vmem:[#allocation7 + $0x154] ss:$12 sps:$4 sm:$0xff]   ;;  %v3708_v30 = vld [vmem:[#allocation7 + $0x170] ss:$12 sps:$4 sm:$0xff]  }
 0x966   :  { %v1417_v61 = vmax.f32 %v1411_v57, 0.0  ;;  %v3705_v29 = vld [vmem:[#allocation7 + $0x168] ss:$12 sps:$4 sm:$0xff]  }
 0x967   :  { %v1418_v2 = vmax.f32 %v1413_v59, 0.0 }
 0x968   :  { %v1419_v3 = vpack.c.bf16 %v1417_v61, %v1415_v60 }
 0x969   :  { %v1420_v56 = vpack.c.bf16 %v1418_v2, %v1416_v63  ;;  %v1620_v2 = vsub.s32 6, %v4175_v36 }
 0x96b   :  { %1585 = vmatprep.mubr.bf16.mxu1 %v1420_v56  ;;  %v1626_v56 = vsub.s32 7, %v4175_v36 }
 0x96c   :  { %1586 = vmatmul.mubr.bf16.vlgmr.msra.gmra.mrb[16].mxu1 %v1419_v3  ;;  %v1621_v3 = vrot.slane %v4182_v39, %v1620_v2 }
 0x96d   :  { %3510 = vmatprep.mubr.msk.bf16.mxu1 %vm3998_vm0, %v3997_v1  ;;  %3495 = vmatpush3.bf16.msra.mxu1 %v3680_v17 }
 0x96e   :  { %3496 = vmatprep.subr.bf16.mxu1 %v3997_v1 }
 0x971   :  { %3497 = vmatpush3.bf16.msra.mxu1 %v3684_v19  ;;  %v1671_v19 = vrot.slane %v4343_v15, %v4178_v37 }
 0x972   :  { %3498 = vmatprep.subr.bf16.mxu1 %v3997_v1 }
 0x975   :  { %3499 = vmatpush3.bf16.msra.mxu1 %v3688_v40 }
 0x976   :  { %3500 = vmatprep.subr.bf16.mxu1 %v3997_v1 }
 0x979   :  { %3501 = vmatpush3.bf16.msra.mxu1 %v3692_v43 }
 0x97a   :  { %3502 = vmatprep.subr.bf16.mxu1 %v3997_v1 }
 0x97d   :  { %3503 = vmatpush3.bf16.msra.mxu1 %v3696_v46 }
 0x97e   :  { %3504 = vmatprep.subr.bf16.mxu1 %v3997_v1 }
 0x981   :  { %3505 = vmatpush3.bf16.msra.mxu1 %v3700_v50 }
 0x982   :  { %3506 = vmatprep.subr.bf16.mxu1 %v3997_v1 }
 0x985   :  { %3507 = vmatpush3.bf16.msra.mxu1 %v3704_v54 }
 0x986   :  { %3508 = vmatprep.subr.bf16.mxu1 %v3997_v1 }
 0x989   :  { %3509 = vmatpush3.bf16.msra.mxu1 %v3708_v30 }
 0x98a   :  { %3519 = vmatprep.subr.mxu1 %v3997_v1 }
 0xa3f   :  { %v3347_v5 = vpop.f32.mrb[16].mxu1 }
 0xa40   :  { %v3348_v7 = vpop.f32.mrb[17].mxu1 }
 0xa41   :  { %v3349_v8 = vadd.f32 %v3348_v7, %v3347_v5  ;;  %v3350_v9 = vpop.f32.mrb[18].mxu1 }
 0xa42   :  { %v3351_v10 = vpop.f32.mrb[19].mxu1 }
 0xa43   :  { %v1588_v11 = vadd.f32 %v3349_v8, %v1456_v6  ;;  %v3352_v53 = vadd.f32 %v3351_v10, %v3350_v9  ;;  %v1627_v10 = vrot.slane %v4182_v39, %v1626_v56 }
 0xa45   :  { %v1591_v12 = vadd.f32 %v3352_v53, %v1456_v6  ;;  %v1594_v13 = vadd.f32 %v1588_v11, %v1265_v41  ;;  %v3691_v41 = vld [vmem:[#allocation7 + $0x10c] ss:$12 sps:$4 sm:$0xff]  }
 0xa46   :  { %1814 = vmatprep.subr.bf16.mxu0 %v3691_v41 }
 0xa47   :  { %1596 = vadd.xlane.f32.xlu0 %v1594_v13  ;;  %v1595_v14 = vadd.f32 %v1591_v12, %v1266_v42  ;;  %v3689_v42 = vld [vmem:[#allocation7 + $0x108] ss:$12 sps:$4 sm:$0xff]  }
 0xa48   :  { %1815 = vmatpush1.bf16.msra.mxu0 %v3689_v42 }
 0xa49   :  { %1598 = vadd.xlane.f32.xlu1 %v1595_v14  ;;  %1816 = vmatprep.subr.bf16.mxu0 %v3695_v44 }
 0xa4c   :  { %1817 = vmatpush1.bf16.msra.mxu0 %v3693_v45 }
 0xa4d   :  { %1818 = vmatprep.subr.bf16.mxu0 %v3699_v47 }
 0xa50   :  { %1819 = vmatpush1.bf16.msra.mxu0 %v3697_v48 }
 0xa51   :  { %1820 = vmatprep.subr.bf16.mxu0 %v3703_v51 }
 0xa54   :  { %1821 = vmatpush1.bf16.msra.mxu0 %v3701_v52 }
 0xa55   :  { %1822 = vmatprep.subr.bf16.mxu0 %v3707_v55 }
 0xa58   :  { %1823 = vmatpush1.bf16.msra.mxu0 %v3705_v29 }
 0xa59   :  { %3514 = vmatprep.subr.mxu0 %v3997_v1 }
 0xad4   :  { %v1597_v21 = vpop.xlane.xlu0 %1596 }
 0xad5   :  { %v1600_v22 = vmul.f32 0.0078125, %v1597_v21 }
 0xad6   :  { %v1599_v23 = vpop.xlane.xlu1 %1598 }
 0xad7   :  { %v1602_v25 = vsub.f32 %v1594_v13, %v1600_v22  ;;  %v1601_v28 = vmul.f32 0.0078125, %v1599_v23  ;;  %v1679_v22 = vrot.slane %v1633_v16, %v4178_v37 }
 0xad9   :  { %v1603_v31 = vsub.f32 %v1595_v14, %v1601_v28  ;;  %v1604_v32 = vmul.f32 %v1602_v25, %v1602_v25  ;;  %v4341_v14 = vld [vmem:[#allocation13 + $0x20] sm:$0xff] }
 0xada   :  { %v1675_v39 = vrot.slane %v4341_v14, %v4178_v37 }
 0xadb   :  { %1606 = vadd.xlane.f32.xlu0 %v1604_v32  ;;  %v1605_v33 = vmul.f32 %v1603_v31, %v1603_v31 }
 0xadd   :  { %1608 = vadd.xlane.f32.xlu1 %v1605_v33 }
 0xb68   :  { %v1607_v57 = vpop.xlane.xlu0 %1606 }
 0xb69   :  { %v1610_v58 = vmul.f32 0.0078125, %v1607_v57 }
 0xb6a   :  { %v1609_v59 = vpop.xlane.xlu1 %1608 }
 0xb6b   :  { %v1612_v60 = vadd.f32 1e-05, %v1610_v58  ;;  %v1611_v61 = vmul.f32 0.0078125, %v1609_v59 }
 0xb6d   :  { %3777 = vrsqrt.f32 %v1612_v60  ;;  %v1613_v63 = vadd.f32 1e-05, %v1611_v61 }
 0xb6f   :  { %3779 = vrsqrt.f32 %v1613_v63 }
 0xb77   :  { %v3778_v5 = vpop.eup %3777 }
 0xb78   :  { %v1616_v6 = vmul.f32 %v3778_v5, %v1602_v25 }
 0xb79   :  { %v3780_v7 = vpop.eup %3779 }
 0xb7a   :  { %v1617_v8 = vmul.f32 %v3780_v7, %v1603_v31  ;;  %v1622_v9 = vmul.f32 %v1621_v3, %v1616_v6 }
 0xb7c   :  { %v1623_v11 = vmul.f32 %v1621_v3, %v1617_v8  ;;  %v4331_v53 = vadd.f32 %v1627_v10, %v1622_v9 }
 0xb7e   :  { %v4333_v12 = vadd.f32 %v1627_v10, %v1623_v11 }
 0xb80   :  { %v1634_v13 = vpack.c.bf16 %v4333_v12, %v4331_v53 }
 0xb82   :  { %1841 = vmatmul.mubr.bf16.vlgmr.msra.gmra.mrb[20].mxu0 %v1634_v13  ;;  %3511 = vmatmul.mubr.bf16.vlgmr.msra.gmra.mrb[20].mxu1 %v1634_v13 }
 0xb83   :  { %3516 = vmatprep.mubr.msk.f32.mxu0 %vm3998_vm0, %v3997_v1  ;;  %3521 = vmatprep.mubr.msk.f32.mxu1 %vm3998_vm0, %v3997_v1 }
 0xc55   :  { %v1842_v17 = vpop.f32.mrb[20].mxu0  ;;  %v1885_v18 = vpop.f32.mrb[20].mxu1 }
 0xc56   :  { %v1844_v20 = vpop.f32.mrb[21].mxu0  ;;  %v3512_v21 = vpop.f32.mrb[21].mxu1  ;;  %v1843_v34 = vadd.f32 %v1842_v17, %v1671_v19  ;;  %v4352_v35 = vadd.f32 %v1885_v18, %v1679_v22 }
 0xc57   :  { %v1845_v23 = vadd.f32 %v1844_v20, %v1675_v39  ;;  %v1846_v25 = vpop.f32.mrb[22].mxu0  ;;  %v1888_v28 = vpop.f32.mrb[22].mxu1 }
 0xc58   :  { %v1848_v31 = vpop.f32.mrb[23].mxu0  ;;  %v3513_v32 = vpop.f32.mrb[23].mxu1  ;;  %v1847_v40 = vadd.f32 %v1846_v25, %v1671_v19  ;;  %v4357_v37 = vadd.f32 %v1888_v28, %v1679_v22 }
 0xc59   :  { %v1849_v33 = vadd.f32 %v1848_v31, %v1675_v39  ;;  %3515 = vmatpush3.xpose.msk.msra.mxu0 %vm407_vm1, %v1845_v23 }
 0xc5a   :  { %3524 = vmatprep.subr.mxu0 %v3997_v1 }
 0xc5b   :  { %3520 = vmatpush3.xpose.msk.msra.mxu1 %vm407_vm1, %v1849_v33 }
 0xc5c   :  { %3517 = vmatmul.mubr.msk.f32.vlgmr.msra.gmra.mrb[24].mxu0 %vm407_vm1, %v1843_v34  ;;  %3529 = vmatprep.subr.mxu1 %v3997_v1 }
 0xc5d   :  { %3525 = vmatpush3.msra.mxu0 %v4352_v35  ;;  %3526 = vmatprep.mubr.msk.f32.mxu0 %vm3998_vm0, %v3997_v1 }
 0xc5e   :  { %3522 = vmatmul.mubr.msk.f32.vlgmr.msra.gmra.mrb[24].mxu1 %vm407_vm1, %v1847_v40  ;;  %3534 = vmatprep.subr.mxu0 %v3997_v1 }
 0xc5f   :  { %3530 = vmatpush3.msra.mxu1 %v4357_v37  ;;  %3531 = vmatprep.mubr.msk.f32.mxu1 %vm3998_vm0, %v3997_v1 }
 0xc60   :  { %3539 = vmatprep.subr.mxu1 %v3997_v1 }
 0xd2f   :  { %v1964_v41 = vpop.f32.mrb[24].mxu0 }
 0xd30   :  { %v2044_v42 = vmul.f32 0.125, %v1964_v41  ;;  %v3518_v43 = vpop.f32.mrb[25].mxu0 }
 0xd31   :  { %v2040_v44 = vpop.f32.mrb[24].mxu1 }
 0xd32   :  { %v2045_v45 = vmul.f32 0.125, %v2040_v44  ;;  %v3523_v46 = vpop.f32.mrb[25].mxu1  ;;  %v2046_v47 = vadd.f32 %v2044_v42, %v4210_v62 }
 0xd34   :  { %v2048_v48 = vsel %vm564_vm4, %v2046_v47, -inf  ;;  %v2047_v50 = vadd.f32 %v2045_v45, %v4213_v4 }
 0xd35   :  { %2049 = vmax.xlane.f32.xlu0 %v2048_v48 }
 0xd36   :  { %v2051_v51 = vsel %vm564_vm4, %v2047_v50, -inf }
 0xd37   :  { %2052 = vmax.xlane.f32.xlu1 %v2051_v51 }
 0xd48   :  { %2306 = vrot.lane.b32.xlu1 %v1849_v33, %s3990_s1 }
 0xd4c   :  { %2226 = vrot.lane.b32.xlu1 %v1843_v34, %s3990_s1 }
 0xdc2   :  { %v2050_v52 = vpop.xlane.xlu0 %2049 }
 0xdc3   :  { %v2054_v54 = vsub.f32 %v2046_v47, %v2050_v52 }
 0xdc4   :  { %v2053_v55 = vpop.xlane.xlu1 %2052 }
 0xdc5   :  { %v2056_v29 = vmul.f32 1.442695, %v2054_v54  ;;  %v2055_v30 = vsub.f32 %v2047_v50, %v2053_v55  ;;  %v3713_v54 = vld [vmem:[#allocation9 + $0x60] sm:$0xff]  }
 0xdc7   :  { %3781 = vpow2.f32 %v2056_v29  ;;  %v2058_v57 = vmul.f32 1.442695, %v2055_v30  ;;  %v3709_v30 = vld [vmem:[#allocation9 + $0x40] sm:$0xff]  }
 0xdc8   :  { %v2307_v63 = vpop.permute.xlu1 %2306 }
 0xdc9   :  { %3783 = vpow2.f32 %v2058_v57  ;;  %v3714_v57 = vld [vmem:[#allocation9 + $0x68] sm:$0xff]  }
 0xdcc   :  { %v2227_v3 = vpop.permute.xlu1 %2226 }
 0xdd1   :  { %v3782_v58 = vpop.eup %3781 }
 0xdd2   :  { %v2060_v59 = vsel %vm564_vm4, %v3782_v58, 0.0 }
 0xdd3   :  { %v3784_v60 = vpop.eup %3783  ;;  %2061 = vadd.xlane.f32.xlu0 %v2060_v59  ;;  %v3711_v59 = vld [vmem:[#allocation9 + $0x50] sm:$0xff]  }
 0xdd4   :  { %v2063_v61 = vsel %vm564_vm4, %v3784_v60, 0.0 }
 0xdd5   :  { %2064 = vadd.xlane.f32.xlu1 %v2063_v61  ;;  %v3715_v61 = vld [vmem:[#allocation9 + $0x70] sm:$0xff]  }
 0xde6   :  { %2304 = vrot.lane.b32.xlu1 %v1847_v40, %s3990_s1 }
 0xde9   :  { %2228 = vrot.lane.b32.xlu0 %v1845_v23, %s3990_s1 }
 0xe60   :  { %v2062_v5 = vpop.xlane.xlu0 %2061 }
 0xe61   :  { %3785 = vrcp.f32 %v2062_v5 }
 0xe62   :  { %v2065_v6 = vpop.xlane.xlu1 %2064 }
 0xe63   :  { %3787 = vrcp.f32 %v2065_v6 }
 0xe64   :  { %v2229_v11 = vpop.permute.xlu0 %2228 }
 0xe66   :  { %v2305_v13 = vpop.permute.xlu1 %2304 }
 0xe6b   :  { %v3786_v7 = vpop.eup %3785 }
 0xe6c   :  { %v2068_v8 = vmul.f32 %v3786_v7, %v3782_v58  ;;  %v3710_v58 = vld [vmem:[#allocation9 + $0x48] sm:$0xff]  }
 0xe6d   :  { %v3788_v9 = vpop.eup %3787 }
 0xe6e   :  { %v2069_v10 = vmul.f32 %v3788_v9, %v3784_v60  ;;  %3527 = vmatmul.mubr.msk.f32.vlgmr.msra.gmra.mrb[26].mxu0 %vm564_vm4, %v2068_v8  ;;  %v3712_v60 = vld [vmem:[#allocation9 + $0x58] sm:$0xff]  }
 0xe6f   :  { %3535 = vmatpush3.xpose.msk.msra.mxu0 %vm407_vm1, %v2229_v11  ;;  %3536 = vmatprep.mubr.msk.f32.mxu0 %vm3998_vm0, %v3997_v1 }
 0xe70   :  { %3532 = vmatmul.mubr.msk.f32.vlgmr.msra.gmra.mrb[26].mxu1 %vm564_vm4, %v2069_v10  ;;  %3544 = vmatprep.subr.mxu0 %v3997_v1 }
 0xe71   :  { %3540 = vmatpush3.xpose.msk.msra.mxu1 %vm407_vm1, %v2307_v63  ;;  %3541 = vmatprep.mubr.msk.f32.mxu1 %vm3998_vm0, %v3997_v1  ;;  %v3716_v63 = vld [vmem:[#allocation9 + $0x78] sm:$0xff]  }
 0xe72   :  { %3537 = vmatmul.mubr.msk.f32.vlgmr.msra.gmra.mrb[28].mxu0 %vm407_vm1, %v2227_v3  ;;  %3549 = vmatprep.subr.mxu1 %v3997_v1 }
 0xe73   :  { %3546 = vmatprep.mubr.msk.f32.mxu0 %vm3998_vm0, %v3997_v1 }
 0xe74   :  { %3542 = vmatmul.mubr.msk.f32.vlgmr.msra.gmra.mrb[28].mxu1 %vm407_vm1, %v2305_v13 }
 0xe75   :  { %3551 = vmatprep.mubr.msk.f32.mxu1 %vm3998_vm0, %v3997_v1 }
 0xf41   :  { %v4394_v39 = vpop.f32.mrb[26].mxu0 }
 0xf42   :  { %v3528_v16 = vpop.f32.mrb[27].mxu0 }
 0xf43   :  { %v4396_v17 = vpop.f32.mrb[26].mxu1 }
 0xf44   :  { %v2216_v18 = vpack.c.bf16 %v4396_v17, %v4394_v39  ;;  %v3533_v19 = vpop.f32.mrb[27].mxu1  ;;  %v2711_v39 = vrot.slane %v4343_v15, %v1226_v27  ;;  %v3720_v27 = vld [vmem:[#allocation10 + $0x90] ss:$8 sps:$4 sm:$0xff]  }
 0xf45   :  { %v2300_v20 = vpop.f32.mrb[28].mxu0 }
 0xf46   :  { %v2382_v21 = vmul.f32 0.125, %v2300_v20  ;;  %v3538_v22 = vpop.f32.mrb[29].mxu0 }
 0xf47   :  { %v2378_v23 = vpop.f32.mrb[28].mxu1 }
 0xf48   :  { %v2383_v25 = vmul.f32 0.125, %v2378_v23  ;;  %v3543_v28 = vpop.f32.mrb[29].mxu1  ;;  %v2384_v31 = vadd.f32 %v2382_v21, %v4210_v62 }
 0xf49   :  { %v3719_v28 = vld [vmem:[#allocation10 + $0x84] ss:$8 sps:$4 sm:$0xff]  }
 0xf4a   :  { %v2386_v32 = vsel %vm564_vm4, %v2384_v31, -inf  ;;  %v2385_v33 = vadd.f32 %v2383_v25, %v4213_v4  ;;  %v3717_v25 = vld [vmem:[#allocation10 + $0x80] ss:$8 sps:$4 sm:$0xff]  }
 0xf4b   :  { %2387 = vmax.xlane.f32.xlu0 %v2386_v32 }
 0xf4c   :  { %v2389_v34 = vsel %vm564_vm4, %v2385_v33, -inf }
 0xf4d   :  { %2390 = vmax.xlane.f32.xlu1 %v2389_v34 }
 0xf5e   :  { %2486 = vrot.lane.b32.xlu1 %v4357_v37, %s3990_s1 }
 0xfd8   :  { %v2388_v40 = vpop.xlane.xlu0 %2387 }
 0xfd9   :  { %v2392_v41 = vsub.f32 %v2384_v31, %v2388_v40  ;;  %v3722_v31 = vld [vmem:[#allocation10 + $0x94] ss:$8 sps:$4 sm:$0xff]  }
 0xfda   :  { %v2391_v42 = vpop.xlane.xlu1 %2390 }
 0xfdb   :  { %v2394_v43 = vmul.f32 1.442695, %v2392_v41  ;;  %v2393_v44 = vsub.f32 %v2385_v33, %v2391_v42 }
 0xfdd   :  { %3789 = vpow2.f32 %v2394_v43  ;;  %v2396_v45 = vmul.f32 1.442695, %v2393_v44  ;;  %v3725_v43 = vld [vmem:[#allocation10 + $0xa4] ss:$8 sps:$4 sm:$0xff]   ;;  %v3723_v44 = vld [vmem:[#allocation10 + $0xa0] ss:$8 sps:$4 sm:$0xff]  }
 0xfde   :  { %v2487_v46 = vpop.permute.xlu1 %2486 }
 0xfdf   :  { %3791 = vpow2.f32 %v2396_v45  ;;  %3550 = vmatpush3.msra.mxu1 %v2487_v46  ;;  %v3728_v45 = vld [vmem:[#allocation10 + $0xb4] ss:$8 sps:$4 sm:$0xff]   ;;  %v3726_v46 = vld [vmem:[#allocation10 + $0xb0] ss:$8 sps:$4 sm:$0xff]  }
 0xfe0   :  { %3566 = vmatprep.subr.bf16.mxu1 %v3997_v1 }
 0xfe7   :  { %v3790_v62 = vpop.eup %3789 }
 0xfe8   :  { %v2398_v4 = vsel %vm564_vm4, %v3790_v62, 0.0 }
 0xfe9   :  { %v3792_v47 = vpop.eup %3791  ;;  %2399 = vadd.xlane.f32.xlu0 %v2398_v4  ;;  %v3729_v4 = vld [vmem:[#allocation10 + $0xc0] ss:$8 sps:$4 sm:$0xff]  }
 0xfea   :  { %v2401_v48 = vsel %vm564_vm4, %v3792_v47, 0.0 }
 0xfed   :  { %2402 = vadd.xlane.f32.xlu0 %v2401_v48  ;;  %v3732_v48 = vld [vmem:[#allocation10 + $0xd0] ss:$8 sps:$4 sm:$0xff]  }
0x1003   :  { %2409 = vrot.lane.b32.xlu0 %v4352_v35, %s3990_s1  ;;  %s3999_s1 = smov [#allocation15]  }
0x1004   :  { %s3122_s25 = sshll.u32 %s3999_s1, 4  ;;  %s3123_s25 = int_to_ptr.vmem [resolvable:$true] %s3122_s25 }
0x1005   :  { %s3947_s26 = scalar_lea.vmem %s3123_s25, 256  ;;  %p3952_p10 = scmp.lt.s32.totalorder %s3123_s25, %s3123_s25 }
0x1006   :  { %p3948_p9 = scmp.ne.s32.totalorder %s3123_s25, %s3947_s26  ;;  %p3953_p11 = scmp.lt.s32.totalorder %s3947_s26, %s3947_s26 }
0x1008   :  { %p3954_p12 = por %p3953_p11, %p3952_p10 }
0x100a   :  { %p3955_p13 = pnand %p3954_p12, %p3948_p9 }
0x1076   :  { %v2400_v37 = vpop.xlane.xlu0 %2399 }
0x1077   :  { %3793 = vrcp.f32 %v2400_v37  ;;  %v3737_v37 = vld [vmem:[#allocation10 + $0xe4] ss:$8 sps:$4 sm:$0xff]  }
0x107a   :  { %v2403_v50 = vpop.xlane.xlu0 %2402 }
0x107b   :  { %3795 = vrcp.f32 %v2403_v50  ;;  %v3735_v50 = vld [vmem:[#allocation10 + $0xe0] ss:$8 sps:$4 sm:$0xff]  }
0x107e   :  { %v2410_v51 = vpop.permute.xlu0 %2409 }
0x107f   :  { %3545 = vmatpush3.msra.mxu0 %v2410_v51  ;;  %v3740_v51 = vld [vmem:[#allocation10 + $0xf4] ss:$8 sps:$4 sm:$0xff]  }
0x1080   :  { %3554 = vmatprep.subr.bf16.mxu0 %v3997_v1 }
0x1081   :  { %v3794_v52 = vpop.eup %3793 }
0x1082   :  { %v2406_v55 = vmul.f32 %v3794_v52, %v3790_v62  ;;  %v3731_v62 = vld [vmem:[#allocation10 + $0xc4] ss:$8 sps:$4 sm:$0xff]   ;;  %v3738_v52 = vld [vmem:[#allocation10 + $0xf0] ss:$8 sps:$4 sm:$0xff]  }
0x1084   :  { %3547 = vmatmul.mubr.msk.f32.vlgmr.msra.gmra.mrb[30].mxu0 %vm564_vm4, %v2406_v55  ;;  %v3742_v55 = vld [vmem:[#allocation12 + $0x80] sm:$0xff]  }
0x1085   :  { %v3796_v29 = vpop.eup %3795  ;;  %3555 = vmatpush3.bf16.msra.mxu0 %v3713_v54  ;;  %3562 = vmatprep.mubr.msk.bf16.mxu0 %vm3998_vm0, %v3997_v1  ;;  %v3741_v54 = vld [vmem:[#allocation12 + $0xc0] sm:$0xff]  }
0x1086   :  { %v2407_v35 = vmul.f32 %v3796_v29, %v3792_v47  ;;  %3556 = vmatprep.subr.bf16.mxu0 %v3997_v1  ;;  %v3734_v47 = vld [vmem:[#allocation10 + $0xd4] ss:$8 sps:$4 sm:$0xff]   ;;  %v3743_v29 = vld [vmem:[#allocation12 + $0xc8] sm:$0xff]  }
0x1088   :  { %3552 = vmatmul.mubr.msk.f32.vlgmr.msra.gmra.mrb[30].mxu1 %vm564_vm4, %v2407_v35  ;;  %v3745_v35 = vld [vmem:[#allocation12 + $0xd0] sm:$0xff]  }
0x1089   :  { %3567 = vmatpush3.bf16.msra.mxu1 %v3709_v30  ;;  %3574 = vmatprep.mubr.msk.bf16.mxu1 %vm3998_vm0, %v3997_v1  ;;  %v3744_v30 = vld [vmem:[#allocation12 + $0x88] sm:$0xff]  }
0x108a   :  { %3568 = vmatprep.subr.bf16.mxu1 %v3997_v1  ;;  %3557 = vmatpush3.bf16.msra.mxu0 %v3714_v57  ;;  %v3746_v57 = vld [vmem:[#allocation12 + $0x90] sm:$0xff]  }
0x108b   :  { %3558 = vmatprep.subr.bf16.mxu0 %v3997_v1 }
0x108d   :  { %3569 = vmatpush3.bf16.msra.mxu1 %v3710_v58  ;;  %v3747_v58 = vld [vmem:[#allocation12 + $0xd8] sm:$0xff]  }
0x108e   :  { %3570 = vmatprep.subr.bf16.mxu1 %v3997_v1  ;;  %3559 = vmatpush3.bf16.msra.mxu0 %v3715_v61  ;;  %v3750_v61 = vld [vmem:[#allocation12 + $0xa0] sm:$0xff]  }
0x108f   :  { %3560 = vmatprep.subr.bf16.mxu0 %v3997_v1 }
0x1091   :  { %3571 = vmatpush3.bf16.msra.mxu1 %v3711_v59  ;;  %v3748_v59 = vld [vmem:[#allocation12 + $0x98] sm:$0xff]  }
0x1092   :  { %3572 = vmatprep.subr.bf16.mxu1 %v3997_v1  ;;  %3561 = vmatpush3.bf16.msra.mxu0 %v3716_v63  ;;  %v3751_v63 = vld [vmem:[#allocation12 + $0xe8] sm:$0xff]  }
0x1093   :  { %2856 = vmatprep.subr.bf16.mxu0 %v3719_v28  ;;  %v2771_v28 = vrot.slane %v4343_v15, %v4302_v49 }
0x1095   :  { %3573 = vmatpush3.bf16.msra.mxu1 %v3712_v60  ;;  %v3749_v60 = vld [vmem:[#allocation12 + $0xe0] sm:$0xff]  }
0x1096   :  { %3388 = vmatprep.subr.bf16.mxu1 %v3741_v54 }
0x1098   :  { %3575 = vmatmul.mubr.msk.bf16.vlgmr.msra.gmra.mrb[32].mxu1 %vm407_vm1, %v2216_v18 }
0x1099   :  { %3389 = vmatpush3.bf16.msra.mxu1 %v3742_v55 }
0x109a   :  { %3390 = vmatprep.subr.bf16.mxu1 %v3743_v29 }
0x109d   :  { %3391 = vmatpush3.bf16.msra.mxu1 %v3744_v30 }
0x109e   :  { %3392 = vmatprep.subr.bf16.mxu1 %v3745_v35 }
0x10a1   :  { %3393 = vmatpush3.bf16.msra.mxu1 %v3746_v57 }
0x10a2   :  { %3394 = vmatprep.subr.bf16.mxu1 %v3747_v58 }
0x10a5   :  { %3395 = vmatpush3.bf16.msra.mxu1 %v3748_v59 }
0x10a6   :  { %3396 = vmatprep.subr.bf16.mxu1 %v3749_v60 }
0x10a9   :  { %3397 = vmatpush3.bf16.msra.mxu1 %v3750_v61 }
0x10aa   :  { %3398 = vmatprep.subr.bf16.mxu1 %v3751_v63 }
0x1157   :  { %v2481_v3 = vpop.f32.mrb[30].mxu0 }
0x1158   :  { %v3548_v5 = vpop.f32.mrb[31].mxu0 }
0x115b   :  { %v2558_v6 = vpop.f32.mrb[30].mxu1 }
0x115c   :  { %v2562_v7 = vpack.c.bf16 %v2558_v6, %v2481_v3  ;;  %v3553_v8 = vpop.f32.mrb[31].mxu1 }
0x115e   :  { %3563 = vmatmul.mubr.msk.bf16.vlgmr.msra.gmra.mrb[32].mxu0 %vm407_vm1, %v2562_v7 }
0x115f   :  { %2888 = vmatprep.mubr.bf16.mxu0 %v3996_v0  ;;  %2857 = vmatpush1.bf16.msra.mxu0 %v3717_v25  ;;  %v3756_v25 = vld [vmem:[#allocation12 + $0xb8] sm:$0xff]  }
0x1160   :  { %2858 = vmatprep.subr.bf16.mxu0 %v3722_v31 }
0x1163   :  { %2859 = vmatpush1.bf16.msra.mxu0 %v3720_v27 }
0x1164   :  { %2860 = vmatprep.subr.bf16.mxu0 %v3725_v43 }
0x1167   :  { %2861 = vmatpush1.bf16.msra.mxu0 %v3723_v44 }
0x1168   :  { %2862 = vmatprep.subr.bf16.mxu0 %v3728_v45 }
0x116b   :  { %v2701_v9 = vpop.f32.mrb[32].mxu1  ;;  %2863 = vmatpush1.bf16.msra.mxu0 %v3726_v46 }
0x116c   :  { %v3576_v10 = vpop.f32.mrb[33].mxu1  ;;  %2864 = vmatprep.subr.bf16.mxu0 %v3731_v62 }
0x116d   :  { %v2704_v11 = vpop.f32.mrb[34].mxu1  ;;  %v2741_v10 = vrot.slane %v4343_v15, %v1257_v24  ;;  %v3754_v24 = vld [vmem:[#allocation12 + $0xb0] sm:$0xff]  }
0x116e   :  { %v3577_v13 = vpop.f32.mrb[35].mxu1 }
0x116f   :  { %2865 = vmatpush1.bf16.msra.mxu0 %v3729_v4 }
0x1170   :  { %2866 = vmatprep.subr.bf16.mxu0 %v3734_v47 }
0x1173   :  { %2867 = vmatpush1.bf16.msra.mxu0 %v3732_v48 }
0x1174   :  { %2868 = vmatprep.subr.bf16.mxu0 %v3737_v37 }
0x1177   :  { %2869 = vmatpush1.bf16.msra.mxu0 %v3735_v50 }
0x1178   :  { %2870 = vmatprep.subr.bf16.mxu0 %v3740_v51 }
0x117b   :  { %2871 = vmatpush1.bf16.msra.mxu0 %v3738_v52 }
0x1231   :  { %v2633_v1 = vpop.f32.mrb[32].mxu0 }
0x1232   :  { %v2702_v16 = vadd.f32 %v2701_v9, %v2633_v1  ;;  %v3564_v17 = vpop.f32.mrb[33].mxu0 }
0x1233   :  { %v2636_v18 = vpop.f32.mrb[34].mxu0  ;;  %v2747_v17 = vrot.slane %v4343_v15, %v1263_v26  ;;  %v2775_v26 = vrot.slane %v4341_v14, %v4302_v49  ;;  %v2941_v49 = vrot.slane %v4343_v15, %v1455_v38 }
0x1234   :  { %v2712_v19 = vadd.f32 %v2711_v39, %v2702_v16  ;;  %v2705_v20 = vadd.f32 %v2704_v11, %v2636_v18  ;;  %v3565_v21 = vpop.f32.mrb[35].mxu0 }
0x1236   :  { %v2713_v22 = vadd.f32 %v2711_v39, %v2705_v20  ;;  %v2714_v23 = vadd.f32 %v2712_v19, %v4331_v53 }
0x1238   :  { %2716 = vadd.xlane.f32.xlu1 %v2714_v23  ;;  %v2715_v0 = vadd.f32 %v2713_v22, %v4333_v12  ;;  %v3752_v22 = vld [vmem:[#allocation12 + $0xa8] sm:$0xff]  }
0x1239   :  { %3399 = vmatpush3.bf16.msra.mxu1 %v3752_v22 }
0x123a   :  { %2718 = vadd.xlane.f32.xlu0 %v2715_v0 }
0x12c5   :  { %v2717_v32 = vpop.xlane.xlu1 %2716 }
0x12c6   :  { %v2720_v33 = vmul.f32 0.0078125, %v2717_v32 }
0x12c7   :  { %v2719_v34 = vpop.xlane.xlu0 %2718 }
0x12c8   :  { %v4435_v40 = vsub.f32 %v2714_v23, %v2720_v33  ;;  %v2721_v41 = vmul.f32 0.0078125, %v2719_v34  ;;  %v3753_v23 = vld [vmem:[#allocation12 + $0xf0] sm:$0xff]  }
0x12c9   :  { %3400 = vmatprep.subr.bf16.mxu1 %v3753_v23 }
0x12ca   :  { %v4437_v42 = vsub.f32 %v2715_v0, %v2721_v41  ;;  %v2724_v53 = vmul.f32 %v4435_v40, %v4435_v40  ;;  %3401 = vmatpush3.bf16.msra.mxu1 %v3754_v24  ;;  %v3755_v0 = vld [vmem:[#allocation12 + $0xf8] sm:$0xff]  }
0x12cb   :  { %3402 = vmatprep.subr.bf16.mxu1 %v3755_v0 }
0x12cc   :  { %2726 = vadd.xlane.f32.xlu0 %v2724_v53  ;;  %v2725_v12 = vmul.f32 %v4437_v42, %v4437_v42 }
0x12ce   :  { %2728 = vadd.xlane.f32.xlu1 %v2725_v12  ;;  %3403 = vmatpush3.bf16.msra.mxu1 %v3756_v25 }
0x1359   :  { %v2727_v3 = vpop.xlane.xlu0 %2726 }
0x135a   :  { %v2730_v5 = vmul.f32 0.0078125, %v2727_v3 }
0x135b   :  { %v2729_v6 = vpop.xlane.xlu1 %2728 }
0x135c   :  { %v2732_v7 = vadd.f32 1e-05, %v2730_v5  ;;  %v2731_v8 = vmul.f32 0.0078125, %v2729_v6 }
0x135e   :  { %3797 = vrsqrt.f32 %v2732_v7  ;;  %v2733_v9 = vadd.f32 1e-05, %v2731_v8  ;;  %v3106_v7 = vrot.slane %v4343_v15, %v1620_v2 }
0x1360   :  { %3799 = vrsqrt.f32 %v2733_v9 }
0x1368   :  { %v3798_v11 = vpop.eup %3797 }
0x1369   :  { %v2736_v13 = vmul.f32 %v3798_v11, %v4435_v40 }
0x136a   :  { %v3800_v39 = vpop.eup %3799 }
0x136b   :  { %v2737_v1 = vmul.f32 %v3800_v39, %v4437_v42  ;;  %v2742_v16 = vmul.f32 %v2741_v10, %v2736_v13 }
0x136d   :  { %v2743_v18 = vmul.f32 %v2741_v10, %v2737_v1  ;;  %v2748_v19 = vadd.f32 %v2747_v17, %v2742_v16  ;;  %v3112_v10 = vrot.slane %v4343_v15, %v1626_v56 }
0x136f   :  { %v2749_v20 = vadd.f32 %v2747_v17, %v2743_v18 }
0x1371   :  { %v2750_v21 = vpack.c.bf16 %v2749_v20, %v2748_v19 }
0x1373   :  { %2889 = vmatmul.mubr.bf16.vlgmr.msra.gmra.mrb[36].mxu0 %v2750_v21 }
0x1446   :  { %v2890_v31 = vpop.f32.mrb[36].mxu0 }
0x1447   :  { %v2891_v27 = vadd.f32 %v2890_v31, %v2771_v28  ;;  %v2892_v32 = vpop.f32.mrb[37].mxu0 }
0x1448   :  { %v2893_v33 = vadd.f32 %v2892_v32, %v2775_v26  ;;  %v2894_v34 = vpop.f32.mrb[38].mxu0 }
0x1449   :  { %v2895_v40 = vadd.f32 %v2894_v34, %v2771_v28  ;;  %v2896_v41 = vpop.f32.mrb[39].mxu0  ;;  %v2899_v53 = vmax.f32 %v2891_v27, 0.0 }
0x144a   :  { %v2897_v42 = vadd.f32 %v2896_v41, %v2775_v26  ;;  %v2900_v43 = vmax.f32 %v2893_v33, 0.0 }
0x144b   :  { %v2901_v12 = vmax.f32 %v2895_v40, 0.0 }
0x144c   :  { %v2902_v44 = vmax.f32 %v2897_v42, 0.0 }
0x144d   :  { %v2903_v45 = vpack.c.bf16 %v2901_v12, %v2899_v53 }
0x144e   :  { %v2904_v46 = vpack.c.bf16 %v2902_v44, %v2900_v43 }
0x1450   :  { %3070 = vmatprep.mubr.bf16.mxu1 %v2904_v46 }
0x1451   :  { %3071 = vmatmul.mubr.bf16.vlgmr.msra.gmra.mrb[36].mxu1 %v2903_v45 }
0x1524   :  { %v3404_v62 = vpop.f32.mrb[36].mxu1 }
0x1525   :  { %v3405_v14 = vpop.f32.mrb[37].mxu1 }
0x1526   :  { %v3406_v4 = vadd.f32 %v3405_v14, %v3404_v62  ;;  %v3407_v47 = vpop.f32.mrb[38].mxu1 }
0x1527   :  { %v3408_v48 = vpop.f32.mrb[39].mxu1 }
0x1528   :  { %v3073_v37 = vadd.f32 %v3406_v4, %v2941_v49  ;;  %v3409_v50 = vadd.f32 %v3408_v48, %v3407_v47 }
0x152a   :  { %v3076_v51 = vadd.f32 %v3409_v50, %v2941_v49  ;;  %v3079_v52 = vadd.f32 %v3073_v37, %v2748_v19 }
0x152c   :  { %3081 = vadd.xlane.f32.xlu0 %v3079_v52  ;;  %v3080_v54 = vadd.f32 %v3076_v51, %v2749_v20 }
0x152e   :  { %3083 = vadd.xlane.f32.xlu1 %v3080_v54 }
0x15b9   :  { %v3082_v55 = vpop.xlane.xlu0 %3081 }
0x15ba   :  { %v3085_v29 = vmul.f32 0.0078125, %v3082_v55 }
0x15bb   :  { %v3084_v30 = vpop.xlane.xlu1 %3083 }
0x15bc   :  { %v3087_v35 = vsub.f32 %v3079_v52, %v3085_v29  ;;  %v3086_v57 = vmul.f32 0.0078125, %v3084_v30 }
0x15be   :  { %v3088_v58 = vsub.f32 %v3080_v54, %v3086_v57  ;;  %v3089_v59 = vmul.f32 %v3087_v35, %v3087_v35 }
0x15c0   :  { %3091 = vadd.xlane.f32.xlu0 %v3089_v59  ;;  %v3090_v38 = vmul.f32 %v3088_v58, %v3088_v58 }
0x15c2   :  { %3093 = vadd.xlane.f32.xlu1 %v3090_v38 }
0x164d   :  { %v3092_v60 = vpop.xlane.xlu0 %3091 }
0x164e   :  { %v3095_v61 = vmul.f32 0.0078125, %v3092_v60 }
0x164f   :  { %v3094_v63 = vpop.xlane.xlu1 %3093 }
0x1650   :  { %v3097_v3 = vadd.f32 1e-05, %v3095_v61  ;;  %v3096_v5 = vmul.f32 0.0078125, %v3094_v63 }
0x1652   :  { %3801 = vrsqrt.f32 %v3097_v3  ;;  %v3098_v6 = vadd.f32 1e-05, %v3096_v5 }
0x1654   :  { %3803 = vrsqrt.f32 %v3098_v6 }
0x165c   :  { %v3802_v8 = vpop.eup %3801 }
0x165d   :  { %v3101_v9 = vmul.f32 %v3802_v8, %v3087_v35 }
0x165e   :  { %v3804_v11 = vpop.eup %3803 }
0x165f   :  { %v3102_v13 = vmul.f32 %v3804_v11, %v3088_v58  ;;  %v3107_v39 = vmul.f32 %v3106_v7, %v3101_v9 }
0x1661   :  { %v3108_v1 = vmul.f32 %v3106_v7, %v3102_v13  ;;  %v3113_v16 = vadd.f32 %v3112_v10, %v3107_v39 }
0x1663   :  { %v3114_v17 = vadd.f32 %v3112_v10, %v3108_v1  ;;  %3115 = vst [vmem:[#allocation15] sm:$0xff] %v3113_v16 }
0x1665   :  { %3116 = vst [vmem:[#allocation15 + $0x8] sm:$0xff] %v3114_v17 }
0x1666   :  { %3958 = shalt.err (!%p3955_p13)
}
0x1667   :  { %s3959_s28 = scalar_lea.hbm %s4487_s8, 256 }
0x1668   :  { %p3960_p0 = scmp.ne.s32.totalorder %s4487_s8, %s3959_s28  ;;  %p3963_p1 = scmp.lt.u32.totalorder %s3959_s28, %s4487_s8 }
0x166a   :  { %p3965_p2 = pnand %p3963_p1, %p3960_p0 }
0x166c   :  { %3968 = shalt.err (!%p3965_p2)
}
0x166d   :  { %3128 = dma.vmem_to_hbm [thread:$0]  %s3123_s25, 256, %s4487_s8, [#allocation6], %s3987_s16, %s3987_s16, %s3988_s18  }
0x166e   :  { %3979 = dma.done.wait [#allocation6], 256  }
0x166f   :  { %3980 = vsyncadd [#allocation6], 4294967040 }
0x1670   :  { %3132 = vsyncpa [#allocation5], 1 }
0x1671   :  { %3133 = vsyncpa [#allocation8], 1 }
0x1672   :  { %3134 = vsyncpa [#allocation11], 1 }
0x1673   :  { %3135 = vsyncpa [#allocation14], 1 }
0x1674   :  { %3136 = vsyncpa [#allocation6], 1 }

</bundles_post_ra>
